<compile_context>
chip_gen: v7x
topology: tpu7x:2x2x1
jax: 0.10.0
libtpu: 0.0.40
codegen_flags: <defaults>
</compile_context>

<pallas_src>
import functools

import jax
import jax.numpy as jnp
from jax.experimental import pallas as pl
from jax.experimental.pallas import tpu as pltpu


_VELTKAMP_C = 8193.0  # 2**13 + 1: split f32's 24-bit significand at 13 bits.


def _round_to_fp16_precision(x):
    """Round f32 to the nearest 11-significant-bit value (fp16 mantissa).

    Veltkamp splitting: the high part of x w.r.t. C = 2**13 + 1 carries at
    most 24 - 13 = 11 significant bits, i.e. exactly float16 mantissa
    precision, while staying in f32 (pure VPU ops, guaranteed to lower).
    # TODO(synk): fp16 exponent saturation (|x| > 65504 -> inf) and subnormal
    # flushing of .half() are not reproduced; irrelevant for unit-scale feats.
    """
    c = jnp.float32(_VELTKAMP_C)
    g = x * c
    return g + (x - g)


def _contrastive_kernel(icd_ref, dis_ref, txt_ref, out_ref, *, logit_scale):
    """Processes a block of B_blk samples.

    icd_ref: (Bb, T, Q, D) image features conditioned on each text
    dis_ref: (Bb, N, Q, D) candidate-image features conditioned on text 0
    txt_ref: (Bb, T, D)    text features
    out_ref: (Bb, 2) f32   per-sample CE losses: [:, 0]=t2i, [:, 1]=i2t
    """
    f32 = jnp.float32
    eps_sq = f32(1e-24)            # F.normalize clamps ||x|| at 1e-12
    scale = f32(logit_scale)

    icd = _round_to_fp16_precision(icd_ref[...].astype(f32))   # (Bb,T,Q,D)
    dis = _round_to_fp16_precision(dis_ref[...].astype(f32))   # (Bb,N,Q,D)
    txt = _round_to_fp16_precision(txt_ref[...].astype(f32))   # (Bb,T,D)

    # Normalize the text features; image norms are folded into the similarity.
    txt_inv = jax.lax.rsqrt(
        jnp.maximum(jnp.sum(txt * txt, axis=-1, keepdims=True), eps_sq))
    txt_n = txt * txt_inv                                       # (Bb,T,D)

    def query_max_sim(img, txt_anchor):
        # img: (Bb, G, Q, D); txt_anchor: (Bb, G or 1, D)
        # Returns (Bb, G): max over Q of <img/||img||, txt_anchor>.
        sim = jnp.sum(img * txt_anchor[:, :, None, :], axis=-1)     # (Bb,G,Q)
        inv = jax.lax.rsqrt(
            jnp.maximum(jnp.sum(img * img, axis=-1), eps_sq))       # (Bb,G,Q)
        return jnp.max(sim * inv, axis=-1)                          # (Bb,G)

    # i2t: text t vs its own Q image-queries (diagonal blocks only).
    logit_i2t = query_max_sim(icd, txt_n)                           # (Bb,T)
    # t2i: anchor text 0 vs each of the N candidate images.
    logit_t2i = query_max_sim(dis, txt_n[:, 0:1, :])                # (Bb,N)

    def ce_target0(z):                                   # (Bb, C) -> (Bb, 1)
        z = z * scale
        m = jnp.max(z, axis=-1, keepdims=True)
        lse = jnp.log(jnp.sum(jnp.exp(z - m), axis=-1, keepdims=True)) + m
        return lse - z[:, 0:1]

    out_ref[:, 0:1] = ce_target0(logit_t2i)
    out_ref[:, 1:2] = ce_target0(logit_i2t)


def _pick_batch_block(batch, per_sample_bytes, budget_bytes=3 * 1024 * 1024):
    """Largest batch block whose single-copy input footprint fits the budget.

    Constraints: the block is either the full batch or a multiple of 8 (Mosaic
    sublane tiling of the (B_blk, 2) output block); keep >= 2 grid steps when
    the batch allows so v7x's second TensorCore gets work.
    """
    blk = max(1, budget_bytes // max(per_sample_bytes, 1))
    if blk >= batch:
        if batch >= 16:
            half = (batch // 2) // 8 * 8
            if half >= 8:
                return half
        return batch
    return min(max(8, blk // 8 * 8), batch)


def contrastive_loss_max_query_matching(img_cond_different_txt,
                                        different_img_cond_same_txt,
                                        all_txt,
                                        temperature=1.0,
                                        logit_scale=None,
                                        batch_block=None):
    """Returns (loss_contrast_t2i, loss_contrast_i2t) as float16 scalars."""
    # TODO(synk): return_max_ids=True path (argmax indices) not implemented.
    if logit_scale is None:
        logit_scale = 1.0 / temperature

    B, T, Q, D = img_cond_different_txt.shape
    _, N, _, _ = different_img_cond_same_txt.shape
    assert all_txt.shape == (B, T, D)
    assert different_img_cond_same_txt.shape == (B, N, Q, D)

    per_sample_bytes = (T * Q + N * Q + T) * D * 4
    if batch_block is None:
        batch_block = _pick_batch_block(B, per_sample_bytes)
    batch_block = min(batch_block, B)
    grid = (pl.cdiv(B, batch_block),)

    # Double-buffered input blocks + f32 intermediates; generous headroom but
    # comfortably under v7x's 64 MiB physical VMEM (128 MiB on v5e/v6e).
    vmem_limit = int(min(max(6 * batch_block * per_sample_bytes + (1 << 20),
                             16 * 1024 * 1024),
                         48 * 1024 * 1024))

    kernel = functools.partial(_contrastive_kernel,
                               logit_scale=float(logit_scale))

    losses = pl.pallas_call(
        kernel,
        out_shape=jax.ShapeDtypeStruct((B, 2), jnp.float32),
        grid=grid,
        in_specs=[
            pl.BlockSpec((batch_block, T, Q, D), lambda b: (b, 0, 0, 0)),
            pl.BlockSpec((batch_block, N, Q, D), lambda b: (b, 0, 0, 0)),
            pl.BlockSpec((batch_block, T, D), lambda b: (b, 0, 0)),
        ],
        out_specs=pl.BlockSpec((batch_block, 2), lambda b: (b, 0)),
        compiler_params=pltpu.CompilerParams(
            dimension_semantics=("parallel",),
            vmem_limit_bytes=vmem_limit),
    )(img_cond_different_txt, different_img_cond_same_txt, all_txt)

    # Mean over the *global* batch in the wrapper (correct under any tiling);
    # PyTorch's CE on half logits returns half -> match the dtype.
    loss_t2i = jnp.mean(losses[:, 0]).astype(jnp.float16)
    loss_i2t = jnp.mean(losses[:, 1]).astype(jnp.float16)
    return loss_t2i, loss_i2t


def _reference(icd, dis, txt, logit_scale):
    # Pure-JAX reference matching the PyTorch forward (.half() round, f32 math).
    def half_round(x):
        return x.astype(jnp.float16).astype(jnp.float32)

    icd, dis, txt = half_round(icd), half_round(dis), half_round(txt)

    def l2norm(x):
        n = jnp.sqrt(jnp.sum(x * x, axis=-1, keepdims=True))
        return x / jnp.maximum(n, 1e-12)

    icd, dis, txt = l2norm(icd), l2norm(dis), l2norm(txt)
    txt0 = txt[:, 0:1, :][:, :, None, :]
    logit_t2i = jnp.max(jnp.sum(dis * txt0, axis=-1), axis=-1)
    logit_i2t = jnp.max(jnp.sum(icd * txt[:, :, None, :], axis=-1), axis=-1)

    def ce0(z):
        z = z * logit_scale
        lse = jax.scipy.special.logsumexp(z, axis=-1)
        return jnp.mean(lse - z[:, 0])

    return ce0(logit_t2i), ce0(logit_i2t)


if __name__ == "__main__":
    B, T, N, Q, D = 16, 4, 4, 8, 32
    key = jax.random.PRNGKey(0)
    k1, k2, k3 = jax.random.split(key, 3)
    img_cond_different_txt = jax.random.normal(k1, (B, T, Q, D), jnp.float32)
    different_img_cond_same_txt = jax.random.normal(k2, (B, N, Q, D), jnp.float32)
    all_txt = jax.random.normal(k3, (B, T, D), jnp.float32)

    loss_t2i, loss_i2t = contrastive_loss_max_query_matching(
        img_cond_different_txt, different_img_cond_same_txt, all_txt,
        temperature=1.0)
    jax.block_until_ready((loss_t2i, loss_i2t))

    ref_t2i, ref_i2t = _reference(
        img_cond_different_txt, different_img_cond_same_txt, all_txt, 1.0)

    assert jnp.allclose(loss_t2i.astype(jnp.float32), ref_t2i, atol=2e-2), (
        loss_t2i, ref_t2i)
    assert jnp.allclose(loss_i2t.astype(jnp.float32), ref_i2t, atol=2e-2), (
        loss_i2t, ref_i2t)

    print("KERNEL_OK")
</pallas_src>

<mosaic_0001>
module attributes {stable_mosaic.version = 11 : i64} {
  func.func @_contrastive_kernel(%arg0: i32, %arg1: memref<8x4x8x32xf32, #tpu.memory_space<vmem>>, %arg2: memref<8x4x8x32xf32, #tpu.memory_space<vmem>>, %arg3: memref<8x4x32xf32, #tpu.memory_space<vmem>>, %arg4: memref<8x2xf32, #tpu.memory_space<vmem>>) attributes {dimension_semantics = [#tpu.dimension_semantics<parallel>], iteration_bounds = array<i64: 2>, scalar_prefetch = 0 : i64, scratch_operands = 0 : i64, tpu.core_type = #tpu.core_type<tc>, window_params = [{transform_indices = @transform_0, window_bounds = array<i64: 8, 4, 8, 32>}, {transform_indices = @transform_1, window_bounds = array<i64: 8, 4, 8, 32>}, {transform_indices = @transform_2, window_bounds = array<i64: 8, 4, 32>}, {transform_indices = @transform_3, window_bounds = array<i64: 8, 2>}]} {
    %c0 = arith.constant 0 : index
    %c0_0 = arith.constant 0 : index
    %c0_1 = arith.constant 0 : index
    %c0_2 = arith.constant 0 : index
    %0 = vector.load %arg1[%c0, %c0_0, %c0_1, %c0_2] : memref<8x4x8x32xf32, #tpu.memory_space<vmem>>, vector<8x4x8x32xf32>
    %cst = arith.constant 8.193000e+03 : f32
    %1 = vector.broadcast %cst : f32 to vector<8x4x8x32xf32>
    %2 = arith.mulf %0, %1 : vector<8x4x8x32xf32>
    %3 = arith.subf %0, %2 : vector<8x4x8x32xf32>
    %4 = arith.addf %2, %3 : vector<8x4x8x32xf32>
    %c0_3 = arith.constant 0 : index
    %c0_4 = arith.constant 0 : index
    %c0_5 = arith.constant 0 : index
    %c0_6 = arith.constant 0 : index
    %5 = vector.load %arg2[%c0_3, %c0_4, %c0_5, %c0_6] : memref<8x4x8x32xf32, #tpu.memory_space<vmem>>, vector<8x4x8x32xf32>
    %cst_7 = arith.constant 8.193000e+03 : f32
    %6 = vector.broadcast %cst_7 : f32 to vector<8x4x8x32xf32>
    %7 = arith.mulf %5, %6 : vector<8x4x8x32xf32>
    %8 = arith.subf %5, %7 : vector<8x4x8x32xf32>
    %9 = arith.addf %7, %8 : vector<8x4x8x32xf32>
    %c0_8 = arith.constant 0 : index
    %c0_9 = arith.constant 0 : index
    %c0_10 = arith.constant 0 : index
    %10 = vector.load %arg3[%c0_8, %c0_9, %c0_10] : memref<8x4x32xf32, #tpu.memory_space<vmem>>, vector<8x4x32xf32>
    %cst_11 = arith.constant 8.193000e+03 : f32
    %11 = vector.broadcast %cst_11 : f32 to vector<8x4x32xf32>
    %12 = arith.mulf %10, %11 : vector<8x4x32xf32>
    %13 = arith.subf %10, %12 : vector<8x4x32xf32>
    %14 = arith.addf %12, %13 : vector<8x4x32xf32>
    %15 = arith.mulf %14, %14 : vector<8x4x32xf32>
    %cst_12 = arith.constant dense<0.000000e+00> : vector<8x4xf32>
    %16 = vector.multi_reduction <add>, %15, %cst_12 [2] : vector<8x4x32xf32> to vector<8x4xf32>
    %17 = vector.shape_cast %16 : vector<8x4xf32> to vector<8x4x1xf32>
    %cst_13 = arith.constant 1.000000e-24 : f32
    %18 = vector.broadcast %cst_13 : f32 to vector<8x4x1xf32>
    %19 = arith.maximumf %17, %18 : vector<8x4x1xf32>
    %20 = math.rsqrt %19 : vector<8x4x1xf32>
    %21 = vector.broadcast %20 : vector<8x4x1xf32> to vector<8x4x32xf32>
    %22 = arith.mulf %14, %21 : vector<8x4x32xf32>
    %23 = vector.shape_cast %22 : vector<8x4x32xf32> to vector<8x4x1x32xf32>
    %24 = vector.broadcast %23 : vector<8x4x1x32xf32> to vector<8x4x8x32xf32>
    %25 = arith.mulf %4, %24 : vector<8x4x8x32xf32>
    %cst_14 = arith.constant dense<0.000000e+00> : vector<8x4x8xf32>
    %26 = vector.multi_reduction <add>, %25, %cst_14 [3] : vector<8x4x8x32xf32> to vector<8x4x8xf32>
    %27 = arith.mulf %4, %4 : vector<8x4x8x32xf32>
    %cst_15 = arith.constant dense<0.000000e+00> : vector<8x4x8xf32>
    %28 = vector.multi_reduction <add>, %27, %cst_15 [3] : vector<8x4x8x32xf32> to vector<8x4x8xf32>
    %cst_16 = arith.constant 1.000000e-24 : f32
    %29 = vector.broadcast %cst_16 : f32 to vector<8x4x8xf32>
    %30 = arith.maximumf %28, %29 : vector<8x4x8xf32>
    %31 = math.rsqrt %30 : vector<8x4x8xf32>
    %32 = arith.mulf %26, %31 : vector<8x4x8xf32>
    %cst_17 = arith.constant dense<0xFF800000> : vector<8x4xf32>
    %33 = vector.multi_reduction <maximumf>, %32, %cst_17 [2] : vector<8x4x8xf32> to vector<8x4xf32>
    %34 = vector.extract_strided_slice %22 {offsets = [0, 0, 0], sizes = [8, 1, 32], strides = [1, 1, 1]} : vector<8x4x32xf32> to vector<8x1x32xf32>
    %35 = vector.shape_cast %34 : vector<8x1x32xf32> to vector<8x1x1x32xf32>
    %36 = vector.broadcast %35 : vector<8x1x1x32xf32> to vector<8x4x8x32xf32>
    %37 = arith.mulf %9, %36 : vector<8x4x8x32xf32>
    %cst_18 = arith.constant dense<0.000000e+00> : vector<8x4x8xf32>
    %38 = vector.multi_reduction <add>, %37, %cst_18 [3] : vector<8x4x8x32xf32> to vector<8x4x8xf32>
    %39 = arith.mulf %9, %9 : vector<8x4x8x32xf32>
    %cst_19 = arith.constant dense<0.000000e+00> : vector<8x4x8xf32>
    %40 = vector.multi_reduction <add>, %39, %cst_19 [3] : vector<8x4x8x32xf32> to vector<8x4x8xf32>
    %cst_20 = arith.constant 1.000000e-24 : f32
    %41 = vector.broadcast %cst_20 : f32 to vector<8x4x8xf32>
    %42 = arith.maximumf %40, %41 : vector<8x4x8xf32>
    %43 = math.rsqrt %42 : vector<8x4x8xf32>
    %44 = arith.mulf %38, %43 : vector<8x4x8xf32>
    %cst_21 = arith.constant dense<0xFF800000> : vector<8x4xf32>
    %45 = vector.multi_reduction <maximumf>, %44, %cst_21 [2] : vector<8x4x8xf32> to vector<8x4xf32>
    %cst_22 = arith.constant 1.000000e+00 : f32
    %46 = vector.broadcast %cst_22 : f32 to vector<8x4xf32>
    %47 = arith.mulf %45, %46 : vector<8x4xf32>
    %cst_23 = arith.constant dense<0xFF800000> : vector<8xf32>
    %48 = vector.multi_reduction <maximumf>, %47, %cst_23 [1] : vector<8x4xf32> to vector<8xf32>
    %49 = vector.shape_cast %48 : vector<8xf32> to vector<8x1xf32>
    %50 = vector.broadcast %49 : vector<8x1xf32> to vector<8x4xf32>
    %51 = arith.subf %47, %50 : vector<8x4xf32>
    %52 = math.exp %51 : vector<8x4xf32>
    %cst_24 = arith.constant dense<0.000000e+00> : vector<8xf32>
    %53 = vector.multi_reduction <add>, %52, %cst_24 [1] : vector<8x4xf32> to vector<8xf32>
    %54 = vector.shape_cast %53 : vector<8xf32> to vector<8x1xf32>
    %55 = math.log %54 : vector<8x1xf32>
    %56 = arith.addf %55, %49 : vector<8x1xf32>
    %57 = vector.extract_strided_slice %47 {offsets = [0, 0], sizes = [8, 1], strides = [1, 1]} : vector<8x4xf32> to vector<8x1xf32>
    %58 = arith.subf %56, %57 : vector<8x1xf32>
    %c0_25 = arith.constant 0 : index
    %c0_26 = arith.constant 0 : index
    %59 = vector.load %arg4[%c0_25, %c0_26] : memref<8x2xf32, #tpu.memory_space<vmem>>, vector<8x1xf32>
    tpu.vector_store %arg4[%c0_25, %c0_26], %58 {strides = array<i32>} : memref<8x2xf32, #tpu.memory_space<vmem>>, vector<8x1xf32>,
    %cst_27 = arith.constant 1.000000e+00 : f32
    %60 = vector.broadcast %cst_27 : f32 to vector<8x4xf32>
    %61 = arith.mulf %33, %60 : vector<8x4xf32>
    %cst_28 = arith.constant dense<0xFF800000> : vector<8xf32>
    %62 = vector.multi_reduction <maximumf>, %61, %cst_28 [1] : vector<8x4xf32> to vector<8xf32>
    %63 = vector.shape_cast %62 : vector<8xf32> to vector<8x1xf32>
    %64 = vector.broadcast %63 : vector<8x1xf32> to vector<8x4xf32>
    %65 = arith.subf %61, %64 : vector<8x4xf32>
    %66 = math.exp %65 : vector<8x4xf32>
    %cst_29 = arith.constant dense<0.000000e+00> : vector<8xf32>
    %67 = vector.multi_reduction <add>, %66, %cst_29 [1] : vector<8x4xf32> to vector<8xf32>
    %68 = vector.shape_cast %67 : vector<8xf32> to vector<8x1xf32>
    %69 = math.log %68 : vector<8x1xf32>
    %70 = arith.addf %69, %63 : vector<8x1xf32>
    %71 = vector.extract_strided_slice %61 {offsets = [0, 0], sizes = [8, 1], strides = [1, 1]} : vector<8x4xf32> to vector<8x1xf32>
    %72 = arith.subf %70, %71 : vector<8x1xf32>
    %c0_30 = arith.constant 0 : index
    %c1 = arith.constant 1 : index
    %73 = vector.load %arg4[%c0_30, %c1] : memref<8x2xf32, #tpu.memory_space<vmem>>, vector<8x1xf32>
    tpu.vector_store %arg4[%c0_30, %c1], %72 {strides = array<i32>} : memref<8x2xf32, #tpu.memory_space<vmem>>, vector<8x1xf32>,
    return
  }
  func.func @transform_0(%arg0: i32) -> (i32, i32, i32, i32) {
    %c0_i32 = arith.constant 0 : i32
    %c0_i32_0 = arith.constant 0 : i32
    %c0_i32_1 = arith.constant 0 : i32
    %c0_i32_2 = arith.constant 0 : i32
    return %arg0, %c0_i32, %c0_i32_0, %c0_i32_1 : i32, i32, i32, i32
  }
  func.func @transform_1(%arg0: i32) -> (i32, i32, i32, i32) {
    %c0_i32 = arith.constant 0 : i32
    %c0_i32_0 = arith.constant 0 : i32
    %c0_i32_1 = arith.constant 0 : i32
    %c0_i32_2 = arith.constant 0 : i32
    return %arg0, %c0_i32, %c0_i32_0, %c0_i32_1 : i32, i32, i32, i32
  }
  func.func @transform_2(%arg0: i32) -> (i32, i32, i32) {
    %c0_i32 = arith.constant 0 : i32
    %c0_i32_0 = arith.constant 0 : i32
    %c0_i32_1 = arith.constant 0 : i32
    return %arg0, %c0_i32, %c0_i32_0 : i32, i32, i32
  }
  func.func @transform_3(%arg0: i32) -> (i32, i32) {
    %c0_i32 = arith.constant 0 : i32
    %c0_i32_0 = arith.constant 0 : i32
    return %arg0, %c0_i32 : i32, i32
  }
}

</mosaic_0001>

<bundles_post_ra>
// kernel: tpu_custom_call.1
= control target key start
LH: loop header
LB: loop body
LE: loop exit
PB: predicated region body
PF: predicated region fallthrough
CT: control target
= control target key end

     0   :  { %8 = vsyncpa [#allocation3], 0  ;;  %s4670_s0 = inlined_call_operand.hbm [shape: f32[16,4,8,32], index: 0, kind: input, shape index: {}]   ;;  %s4671_s1 = inlined_call_operand.hbm [shape: f32[16,4,8,32], index: 1, kind: input, shape index: {}]   ;;  %s4672_s2 = inlined_call_operand.hbm [shape: f32[16,4,32], index: 2, kind: input, shape index: {}]   ;;  %s4673_s3 = inlined_call_operand.vmem [shape: f32[16,2], index: 3, kind: output, shape index: {}]  }
   0x1   :  { %10 = vsyncpa [#allocation3 + $0x1], 0 }
   0x2   :  { %11 = vsyncpa [#allocation5], 0 }
   0x3   :  { %13 = vsyncpa [#allocation5 + $0x1], 0  ;;  %s3116_s12 = smov 0   ;;  %s3118_s13 = smov 0  }
   0x4   :  { %s3120_s14 = smov 0   ;;  %s3122_s15 = smov 0  }
   0x5 LB: > { %s3135_s16 = sadd.s32 4294967295, %s3084_s15   ;;  %s3138_s17 = sadd.s32 1, %s3084_s15   ;;  %s3084_s15 = sphi %s3122_s15, %s4805_s15   ;;  %s3080_s14 = sphi %s3120_s14, %s4804_s14   ;;  %s3076_s13 = sphi %s3118_s13, %s4803_s13   ;;  %s3072_s12 = sphi %s3116_s12, %s4802_s12  }
   0x6   : > { %s23_s18 = ssub.s32 %s3084_s15, %s3138_s17  ;;  %s26_s19 = sadd.s32 1, %s3080_s14 }
   0x7   : > { %p24_p0 = scmp.eq.s32.totalorder %s23_s18, 0  ;;  %p33_p1 = scmp.ne.s32.totalorder %s3080_s14, %s3076_s13 }
   0x8   : > { %p34_p2 = scmp.eq.s32.totalorder %s3084_s15, 0  ;;  %p39_p3 = scmp.ne.s32.totalorder %s3076_s13, %s3072_s12 }
   0x9   : > { %s3148_s20 = scalar_select %p24_p0, %s3080_s14, %s26_s19  }
   0xa   : > { %p35_p4 = por %p34_p2, %p33_p1  ;;  %p40_p5 = scmp.eq.s32.totalorder %s3135_s16, 0 }
   0xb   : > { %p2734_p6 = scmp.lt.s32.totalorder %s3084_s15, 2  ;;  %s3157_s22 = sand.u32 1, %s3080_s14  }
   0xc   : > { %p3152_p7 = por %p40_p5, %p39_p3  ;;  %s2695_s23 = sshll.u32 %s3157_s22, 8 }
   0xd   : > { %s2714_s24 = sshll.u32 %s3084_s15, 12  ;;  %p3161_p8 = pnand %p2734_p6, %p35_p4 }
   0xe   : > { %s4702_s21 = scalar_select %p3152_p7, 1, 0 }
   0xf   : > { %s163_s26 = sand.u32 1, %s3084_s15   ;;  %s3171_s29 = scalar_lea.hbm %s4671_s1, %s2714_s24 }
  0x10   : > { %s167_s30 = scalar_lea.vmem [#allocation4], %s2695_s23  ;;  %s3179_s5 = scalar_lea.sflag [#allocation5], %s163_s26 }
  0x11   : > { %s175_s4 = sshll.u32 %s167_s30, 4  ;;  %s2956_s6 = scalar_lea.hbm %s3171_s29, 4096  ;;  %s3176_s4 = int_to_ptr.vmem [resolvable:$true] %s175_s4 }
  0x12   : > { %p2957_p11 = scmp.ne.s32.totalorder %s3171_s29, %s2956_s6  ;;  %p3185_p12 = pneg %p3161_p8 }
  0x13   : > { %s2961_s10 = scalar_lea.hbm %s4671_s1, 8192  ;;  %p2962_p1 = scmp.lt.u32.totalorder %s3171_s29, %s4671_s1 }
  0x14   : > { %p2959_p13 = pnand %p3185_p12, %p2957_p11  ;;  %p2963_p2 = scmp.lt.u32.totalorder %s2961_s10, %s2956_s6 }
  0x15   : > { %p2965_p4 = scmp.lt.u32.totalorder %s2956_s6, %s3171_s29 }
  0x16   : > { %p2960_p0 = pneg %p2959_p13  ;;  %p2964_p3 = por %p2963_p2, %p2962_p1 }
  0x18   : > { %p2966_p5 = por %p2965_p4, %p2964_p3 }
  0x1a   : > { %p2967_p6 = pnand %p2966_p5, %p2960_p0 }
  0x1c   : > { %2970 = shalt.err (!%p2967_p6)
}
  0x1d   : > { %s2971_s18 = scalar_lea.vmem %s3176_s4, 4096  ;;  %s3086_s19 = smov [#allocation4]  }
  0x1e   : > { %p2972_p11 = scmp.ne.s32.totalorder %s3176_s4, %s2971_s18  ;;  %s2976_s26 = sshll.u32 %s3086_s19, 4  ;;  %s2977_s26 = int_to_ptr.vmem [resolvable:$false] %s2976_s26 }
  0x1f   : > { %s2978_s27 = scalar_lea.vmem %s2977_s26, 8192  ;;  %p2979_p10 = scmp.lt.s32.totalorder %s3176_s4, %s2977_s26 }
  0x20   : > { %p2974_p13 = pnand %p2972_p11, %p3185_p12  ;;  %p2980_p7 = scmp.lt.s32.totalorder %s2978_s27, %s2971_s18 }
  0x22   : > { %p2975_p9 = pneg %p2974_p13  ;;  %p2981_p1 = por %p2980_p7, %p2979_p10 }
  0x24   : > { %p2982_p2 = pnand %p2981_p1, %p2975_p9 }
  0x26   : > { %2985 = shalt.err (!%p2982_p2)
}
  0x27   : > { %s3087_s28 = smov 128   ;;  %s3088_s30 = smov 8  }
  0x28   : > { %2730 = dma.hbm_to_vmem [thread:$0]  (!%p3161_p8), %s3171_s29, 4096, %s3176_s4, %s3179_s5, %s3087_s28, %s3087_s28, %s3088_s30  }
  0x29   : > { %p4705_p7 = scmp.lt.s32.totalorder %s3084_s15, 3  ;;  %p4706_p9 = scmp.ge.s32.totalorder %s3084_s15, 1 }
  0x2a   : > { %s3225_s10 = scalar_lea.hbm %s4670_s0, %s2714_s24  ;;  %s145_s11 = scalar_lea.vmem [#allocation2], %s2695_s23 }
  0x2b   : > { %p3216_p10 = pnand %p4706_p9, %p4705_p7  ;;  %s153_s12 = sshll.u32 %s145_s11, 4  ;;  %s3230_s12 = int_to_ptr.vmem [resolvable:$true] %s153_s12 }
  0x2c   : > { %s2703_s29 = sshll.u32 %s3157_s22, 5  ;;  %s142_s4 = scalar_lea.sflag [#allocation3], %s3157_s22 }
  0x2d   : > { %s4707_s6 = scalar_select %p3216_p10, 1, 0 }
  0x2e   : > { %s2986_s18 = scalar_lea.hbm %s3225_s10, 4096  ;;  %s2991_s24 = scalar_lea.hbm %s4670_s0, 8192 }
  0x2f   : > { %p2987_p0 = scmp.ne.s32.totalorder %s3225_s10, %s2986_s18  ;;  %p2992_p5 = scmp.lt.u32.totalorder %s3225_s10, %s4670_s0 }
  0x30   : > { %p2993_p6 = scmp.lt.u32.totalorder %s2991_s24, %s2986_s18  ;;  %p2995_p13 = scmp.lt.u32.totalorder %s2986_s18, %s3225_s10 }
  0x31   : > { %p2989_p3 = pnand %p2987_p0, %p3185_p12 }
  0x32   : > { %p2994_p11 = por %p2993_p6, %p2992_p5 }
  0x33   : > { %p2990_p4 = pneg %p2989_p3 }
  0x34   : > { %p2996_p1 = por %p2995_p13, %p2994_p11 }
  0x36   : > { %p2997_p2 = pnand %p2996_p1, %p2990_p4 }
  0x38   : > { %3000 = shalt.err (!%p2997_p2)
}
  0x39   : > { %s3001_s23 = scalar_lea.vmem %s3230_s12, 4096  ;;  %s3089_s9 = smov [#allocation2]  }
  0x3a   : > { %p3002_p7 = scmp.ne.s32.totalorder %s3230_s12, %s3001_s23  ;;  %s3006_s11 = sshll.u32 %s3089_s9, 4  ;;  %s3007_s11 = int_to_ptr.vmem [resolvable:$false] %s3006_s11 }
  0x3b   : > { %s3008_s19 = scalar_lea.vmem %s3007_s11, 8192  ;;  %p3009_p3 = scmp.lt.s32.totalorder %s3230_s12, %s3007_s11 }
  0x3c   : > { %p3004_p9 = pnand %p3002_p7, %p3185_p12  ;;  %p3010_p10 = scmp.lt.s32.totalorder %s3008_s19, %s3001_s23 }
  0x3e   : > { %p3005_p0 = pneg %p3004_p9  ;;  %p3011_p5 = por %p3010_p10, %p3009_p3 }
  0x40   : > { %p3012_p6 = pnand %p3011_p5, %p3005_p0 }
  0x42   : > { %3015 = shalt.err (!%p3012_p6)
}
  0x43   : > { %2727 = dma.hbm_to_vmem [thread:$0]  (!%p3161_p8), %s3225_s10, 4096, %s3230_s12, %s142_s4, %s3087_s28, %s3087_s28, %s3088_s30  }
  0x44   : > { %s2717_s18 = sshll.u32 %s3084_s15, 9  ;;  %s189_s26 = scalar_lea.vmem [#allocation6], %s2703_s29 }
  0x45   : > { %s196_s24 = sshll.u32 %s189_s26, 4  ;;  %s3265_s23 = scalar_lea.hbm %s4672_s2, %s2717_s18  ;;  %s3267_s24 = int_to_ptr.vmem [resolvable:$true] %s196_s24 }
  0x46   : > { %s3016_s9 = scalar_lea.hbm %s3265_s23, 512  ;;  %s3021_s28 = scalar_lea.hbm %s4672_s2, 1024 }
  0x47   : > { %p3017_p10 = scmp.ne.s32.totalorder %s3265_s23, %s3016_s9  ;;  %p3022_p13 = scmp.lt.u32.totalorder %s3265_s23, %s4672_s2 }
  0x48   : > { %p3023_p1 = scmp.lt.u32.totalorder %s3021_s28, %s3016_s9  ;;  %p3025_p7 = scmp.lt.u32.totalorder %s3016_s9, %s3265_s23 }
  0x49   : > { %p3019_p4 = pnand %p3017_p10, %p3185_p12 }
  0x4a   : > { %p3024_p2 = por %p3023_p1, %p3022_p13 }
  0x4b   : > { %p3020_p11 = pneg %p3019_p4 }
  0x4c   : > { %p3026_p9 = por %p3025_p7, %p3024_p2 }
  0x4e   : > { %p3027_p0 = pnand %p3026_p9, %p3020_p11 }
  0x50   : > { %3030 = shalt.err (!%p3027_p0)
}
  0x51   : > { %s3031_s12 = scalar_lea.vmem %s3267_s24, 512  ;;  %s3090_s29 = smov [#allocation6]  }
  0x52   : > { %p3032_p3 = scmp.ne.s32.totalorder %s3267_s24, %s3031_s12  ;;  %s3036_s4 = sshll.u32 %s3090_s29, 4  ;;  %s3037_s4 = int_to_ptr.vmem [resolvable:$false] %s3036_s4 }
  0x53   : > { %s3038_s11 = scalar_lea.vmem %s3037_s4, 1024  ;;  %p3039_p10 = scmp.lt.s32.totalorder %s3267_s24, %s3037_s4 }
  0x54   : > { %p3034_p5 = pnand %p3032_p3, %p3185_p12  ;;  %p3040_p4 = scmp.lt.s32.totalorder %s3038_s11, %s3031_s12 }
  0x56   : > { %p3035_p6 = pneg %p3034_p5  ;;  %p3041_p13 = por %p3040_p4, %p3039_p10 }
  0x58   : > { %p3042_p1 = pnand %p3041_p13, %p3035_p6 }
  0x5a   : > { %3045 = shalt.err (!%p3042_p1)
}
  0x5b   : > { %s3091_s19 = smov 64   ;;  %s3092_s18 = smov 4  }
  0x5c   : > { %2733 = dma.hbm_to_vmem [thread:$0]  (!%p3161_p8), %s3265_s23, 512, %s3267_s24, %s3179_s5, %s3091_s19, %s3091_s19, %s3092_s18  }
  0x5d   : > { %p4708_p12 = scmp.ne.s32.totalorder %s4707_s6, 0 }
  0x5f   : > { %208 = sbr.rel (%p4708_p12) target bundleno = 1246 (0x4de), region = 32 }
  0x66   : > { %s210_s7 = sand.u32 1, %s3076_s13   ;;  %p4709_p11 = scmp.ne.s32.totalorder %s4702_s21, 0 }
  0x67   : > { %s2707_s26 = sshll.u32 %s210_s7, 8  ;;  %s211_s27 = scalar_lea.sflag [#allocation3], %s210_s7 }
  0x68   : > { %s3294_s8 = scalar_lea.vmem [#allocation2], %s2707_s26 }
  0x69   : > { %3063 = dma.done.wait (%p4709_p11), %s211_s27, 4096  }
  0x6a   : > { %3065 = vsyncadd (%p4709_p11), %s211_s27, 4294963200  ;;  %s219_s9 = sand.u32 1, %s3135_s16   ;;  %s3301_s5 = scalar_lea.vmem [#allocation4], %s2707_s26 }
  0x6b   : > { %s220_s25 = scalar_lea.sflag [#allocation5], %s219_s9 }
  0x6c   : > { %3067 = dma.done.wait (%p4709_p11), %s220_s25, 4608  }
  0x6d   : > { %3069 = vsyncadd (%p4709_p11), %s220_s25, 4294962688  ;;  %s2709_s6 = sshll.u32 %s210_s7, 5  ;;  %vm567_vm0 = vcmask 257024   ;;  %v271_v30 = vld [vmem:[%s3294_s8] sm:$0xff]  ;;  %v272_v34 = vld [vmem:[%s3294_s8 + $0x8] sm:$0xff]  ;;  %vm1008_vm1 = vcmask 261120  }
  0x6e   : > { %s232_s24 = scalar_lea.vmem [#allocation6], %s2709_s6  ;;  %v275_v35 = vld [vmem:[%s3294_s8 + $0x20] sm:$0xff]  ;;  %v303_v43 = vmul.f32 8193.0, %v271_v30  ;;  %v276_v44 = vld [vmem:[%s3294_s8 + $0x28] sm:$0xff]  ;;  %v273_v45 = vld [vmem:[%s3294_s8 + $0x10] sm:$0xff] }
  0x6f   : > { %v529_v0 = vld [vmem:[%s232_s24 + $0x8] sm:$0xf]  ;;  %v527_v1 = vld [vmem:[%s232_s24] sm:$0xf]  ;;  %v530_v2 = vld [vmem:[%s232_s24 + $0xc] sm:$0xf] }
  0x70   : > { %v537_v3 = vmul.f32 8193.0, %v529_v0  ;;  %v535_v4 = vmul.f32 8193.0, %v527_v1  ;;  %v538_v5 = vmul.f32 8193.0, %v530_v2  ;;  %v335_v51 = vsub.f32 %v271_v30, %v303_v43 }
  0x71   : > { %v528_v6 = vld [vmem:[%s232_s24 + $0x4] sm:$0xf]  ;;  %v531_v7 = vld [vmem:[%s232_s24 + $0x10] sm:$0xf]  ;;  %v532_v8 = vld [vmem:[%s232_s24 + $0x14] sm:$0xf] }
  0x72   : > { %v545_v9 = vsub.f32 %v529_v0, %v537_v3  ;;  %v543_v10 = vsub.f32 %v527_v1, %v535_v4  ;;  %v546_v11 = vsub.f32 %v530_v2, %v538_v5  ;;  %v536_v12 = vmul.f32 8193.0, %v528_v6  ;;  %v533_v13 = vld [vmem:[%s232_s24 + $0x18] sm:$0xf]  ;;  %v534_v14 = vld [vmem:[%s232_s24 + $0x1c] sm:$0xf] }
  0x73   : > { %v539_v15 = vmul.f32 8193.0, %v531_v7  ;;  %v540_v16 = vmul.f32 8193.0, %v532_v8  ;;  %v541_v17 = vmul.f32 8193.0, %v533_v13  ;;  %v3348_v57 = vadd.f32 %v335_v51, %v303_v43 }
  0x74   : > { %v3307_v18 = vadd.f32 %v545_v9, %v537_v3  ;;  %v3309_v19 = vadd.f32 %v543_v10, %v535_v4  ;;  %v3311_v20 = vadd.f32 %v546_v11, %v538_v5  ;;  %v544_v21 = vsub.f32 %v528_v6, %v536_v12  ;;  %v277_v50 = vld [vmem:[%s3294_s8 + $0x30] sm:$0xff]  ;;  %v279_v60 = vld [vmem:[%s3294_s8 + $0x40] sm:$0xff]  ;;  %v280_v1 = vld [vmem:[%s3294_s8 + $0x48] sm:$0xff]  ;;  %s3095_s21 = smov 1   ;;  %p267_p8 = scmp.lt.s32.totalorder %s3135_s16, 1 }
  0x75   : > { %v547_v22 = vsub.f32 %v531_v7, %v539_v15  ;;  %v548_v23 = vsub.f32 %v532_v8, %v540_v16  ;;  %v549_v24 = vsub.f32 %v533_v13, %v541_v17  ;;  %v542_v25 = vmul.f32 8193.0, %v534_v14  ;;  %v278_v13 = vld [vmem:[%s3294_s8 + $0x38] sm:$0xff]  ;;  %v284_v43 = vld [vmem:[%s3294_s8 + $0x68] sm:$0xff] }
  0x76   : > { %v561_v26 = vmul.f32 %v3307_v18, %v3307_v18  ;;  %v559_v27 = vmul.f32 %v3309_v19, %v3309_v19  ;;  %v562_v28 = vmul.f32 %v3311_v20, %v3311_v20  ;;  %v3319_v29 = vadd.f32 %v544_v21, %v536_v12  ;;  %v274_v12 = vld [vmem:[%s3294_s8 + $0x18] sm:$0xff]  ;;  %s4807_s16 = smov (!%p267_p8, %s3135_s16), 1 }
  0x77   : > { %v3322_v31 = vadd.f32 %v547_v22, %v539_v15  ;;  %v3324_v32 = vadd.f32 %v548_v23, %v540_v16  ;;  %v550_v33 = vsub.f32 %v534_v14, %v542_v25  ;;  %v3332_v39 = vadd.f32 %v549_v24, %v541_v17  ;;  %v281_v23 = vld [vmem:[%s3294_s8 + $0x50] sm:$0xff]  ;;  %s2710_s23 = sshll.u32 %s4807_s16, 3 }
  0x78   : > { %v574_v36 = vsel %vm567_vm0, %v561_v26, 0.0  ;;  %v568_v37 = vsel %vm567_vm0, %v559_v27, 0.0  ;;  %v560_v38 = vmul.f32 %v3319_v29, %v3319_v29  ;;  %v577_v40 = vsel %vm567_vm0, %v562_v28, 0.0  ;;  %v283_v28 = vld [vmem:[%s3294_s8 + $0x60] sm:$0xff]  ;;  %s270_s28 = scalar_lea.vmem %s4673_s3, %s2710_s23 }
  0x79   : > { %575 = vadd.xlane.f32.xlu1 %v574_v36  ;;  %569 = vadd.xlane.f32.xlu0 %v568_v37  ;;  %v563_v41 = vmul.f32 %v3322_v31, %v3322_v31  ;;  %v564_v42 = vmul.f32 %v3324_v32, %v3324_v32  ;;  %v3342_v47 = vadd.f32 %v550_v33, %v542_v25  ;;  %v304_v48 = vmul.f32 8193.0, %v272_v34 }
  0x7a   : > { %v571_v46 = vsel %vm567_vm0, %v560_v38, 0.0  ;;  %v307_v49 = vmul.f32 8193.0, %v275_v35  ;;  %v565_v52 = vmul.f32 %v3332_v39, %v3332_v39  ;;  %v308_v55 = vmul.f32 8193.0, %v276_v44 }
  0x7b   : > { %v336_v53 = vsub.f32 %v272_v34, %v304_v48  ;;  %v580_v56 = vsel %vm567_vm0, %v563_v41, 0.0  ;;  %v305_v58 = vmul.f32 8193.0, %v273_v45  ;;  %v309_v59 = vmul.f32 8193.0, %v277_v50 }
  0x7c   : > { %v339_v54 = vsub.f32 %v275_v35, %v307_v49  ;;  %v583_v61 = vsel %vm567_vm0, %v564_v42, 0.0  ;;  %v566_v62 = vmul.f32 %v3342_v47, %v3342_v47  ;;  %v340_v0 = vsub.f32 %v276_v44, %v308_v55  ;;  %v282_v44 = vld [vmem:[%s3294_s8 + $0x58] sm:$0xff] }
  0x7d   : > { %578 = vadd.xlane.f32.xlu1 %v577_v40  ;;  %572 = vadd.xlane.f32.xlu0 %v571_v46  ;;  %v3354_v63 = vadd.f32 %v336_v53, %v304_v48  ;;  %v311_v3 = vmul.f32 8193.0, %v279_v60  ;;  %v586_v4 = vsel %vm567_vm0, %v565_v52, 0.0  ;;  %v1105_v5 = vmul.f32 %v3348_v57, %v3348_v57  ;;  %v285_v52 = vld [vmem:[%s3294_s8 + $0x70] sm:$0xff] }
  0x7e   : > { %v3357_v2 = vadd.f32 %v339_v54, %v307_v49  ;;  %v337_v6 = vsub.f32 %v273_v45, %v305_v58  ;;  %v341_v7 = vsub.f32 %v277_v50, %v309_v59  ;;  %v589_v8 = vsel %vm567_vm0, %v566_v62, 0.0 }
  0x7f   : > { %v1106_v9 = vmul.f32 %v3354_v63, %v3354_v63  ;;  %v3365_v10 = vadd.f32 %v340_v0, %v308_v55  ;;  %v312_v11 = vmul.f32 8193.0, %v280_v1  ;;  %v343_v15 = vsub.f32 %v279_v60, %v311_v3 }
  0x80   : > { %v1109_v14 = vmul.f32 %v3357_v2, %v3357_v2  ;;  %v1137_v16 = vsel %vm1008_vm1, %v1105_v5, 0.0  ;;  %v3372_v17 = vadd.f32 %v337_v6, %v305_v58  ;;  %v3374_v21 = vadd.f32 %v341_v7, %v309_v59  ;;  %v287_v58 = vld [vmem:[%s3294_s8 + $0x80] sm:$0xff]  ;;  %v288_v7 = vld [vmem:[%s3294_s8 + $0x88] sm:$0xff] }
  0x81   : > { %581 = vadd.xlane.f32.xlu0 %v580_v56  ;;  %584 = vadd.xlane.f32.xlu1 %v583_v61  ;;  %v306_v22 = vmul.f32 8193.0, %v274_v12  ;;  %v1140_v24 = vsel %vm1008_vm1, %v1106_v9, 0.0  ;;  %v1110_v25 = vmul.f32 %v3365_v10, %v3365_v10  ;;  %v344_v26 = vsub.f32 %v280_v1, %v312_v11 }
  0x82   : > { %v310_v27 = vmul.f32 8193.0, %v278_v13  ;;  %v3381_v30 = vadd.f32 %v343_v15, %v311_v3  ;;  %v313_v33 = vmul.f32 8193.0, %v281_v23  ;;  %v1149_v34 = vsel %vm1008_vm1, %v1109_v14, 0.0 }
  0x83   : > { %v1107_v35 = vmul.f32 %v3372_v17, %v3372_v17  ;;  %v1111_v36 = vmul.f32 %v3374_v21, %v3374_v21  ;;  %v338_v37 = vsub.f32 %v274_v12, %v306_v22  ;;  %v1152_v38 = vsel %vm1008_vm1, %v1110_v25, 0.0 }
  0x84   : > { %v3389_v40 = vadd.f32 %v344_v26, %v312_v11  ;;  %v342_v41 = vsub.f32 %v278_v13, %v310_v27  ;;  %v315_v42 = vmul.f32 8193.0, %v283_v28  ;;  %v1113_v45 = vmul.f32 %v3381_v30, %v3381_v30  ;;  %v291_v26 = vld [vmem:[%s3294_s8 + $0xa0] sm:$0xff] }
  0x85   : > { %587 = vadd.xlane.f32.xlu0 %v586_v4  ;;  %590 = vadd.xlane.f32.xlu1 %v589_v8  ;;  %v345_v46 = vsub.f32 %v281_v23, %v313_v33  ;;  %v1143_v48 = vsel %vm1008_vm1, %v1107_v35, 0.0  ;;  %v3396_v49 = vadd.f32 %v338_v37, %v306_v22  ;;  %v316_v50 = vmul.f32 8193.0, %v284_v43  ;;  %v286_v8 = vld [vmem:[%s3294_s8 + $0x78] sm:$0xff] }
  0x86   : > { %v314_v51 = vmul.f32 8193.0, %v282_v44  ;;  %v1155_v53 = vsel %vm1008_vm1, %v1111_v36, 0.0  ;;  %v1114_v54 = vmul.f32 %v3389_v40, %v3389_v40  ;;  %v3402_v55 = vadd.f32 %v342_v41, %v310_v27 }
  0x87   : > { %4710 = vst [vmem:[#allocation9_spill] sm:$0xff] %v3396_v49  ;;  %v347_v56 = vsub.f32 %v283_v28, %v315_v42  ;;  %v3405_v59 = vadd.f32 %v345_v46, %v313_v33  ;;  %v317_v60 = vmul.f32 8193.0, %v285_v52  ;;  %v1161_v61 = vsel %vm1008_vm1, %v1113_v45, 0.0 }
  0x88   : > { %v1108_v62 = vmul.f32 %v3396_v49, %v3396_v49  ;;  %v348_v0 = vsub.f32 %v284_v43, %v316_v50  ;;  %v346_v1 = vsub.f32 %v282_v44, %v314_v51  ;;  %v1164_v3 = vsel %vm1008_vm1, %v1114_v54, 0.0  ;;  %v292_v43 = vld [vmem:[%s3294_s8 + $0xa8] sm:$0xff]  ;;  %v290_v44 = vld [vmem:[%s3294_s8 + $0x98] sm:$0xff] }
  0x89   : > { %1138 = vadd.xlane.f32.xlu0 %v1137_v16  ;;  %1141 = vadd.xlane.f32.xlu1 %v1140_v24  ;;  %v1112_v4 = vmul.f32 %v3402_v55, %v3402_v55  ;;  %v3413_v5 = vadd.f32 %v347_v56, %v315_v42  ;;  %v319_v6 = vmul.f32 8193.0, %v287_v58  ;;  %v1115_v9 = vmul.f32 %v3405_v59, %v3405_v59  ;;  %v289_v16 = vld [vmem:[%s3294_s8 + $0x90] sm:$0xff] }
  0x8a   : > { %v349_v11 = vsub.f32 %v285_v52, %v317_v60  ;;  %v1146_v12 = vsel %vm1008_vm1, %v1108_v62, 0.0  ;;  %v3420_v13 = vadd.f32 %v348_v0, %v316_v50  ;;  %v3422_v14 = vadd.f32 %v346_v1, %v314_v51 }
  0x8b   : > { %v320_v15 = vmul.f32 8193.0, %v288_v7  ;;  %v1158_v22 = vsel %vm1008_vm1, %v1112_v4, 0.0  ;;  %v1117_v23 = vmul.f32 %v3413_v5, %v3413_v5  ;;  %v351_v24 = vsub.f32 %v287_v58, %v319_v6 }
  0x8c   : > { %v318_v25 = vmul.f32 8193.0, %v286_v8  ;;  %v3429_v27 = vadd.f32 %v349_v11, %v317_v60  ;;  %v321_v28 = vmul.f32 8193.0, %v289_v16  ;;  %v1167_v33 = vsel %vm1008_vm1, %v1115_v9, 0.0 }
  0x8d   : > { %1150 = vadd.xlane.f32.xlu0 %v1149_v34  ;;  %1153 = vadd.xlane.f32.xlu1 %v1152_v38  ;;  %v1118_v34 = vmul.f32 %v3420_v13, %v3420_v13  ;;  %v1116_v35 = vmul.f32 %v3422_v14, %v3422_v14  ;;  %v352_v36 = vsub.f32 %v288_v7, %v320_v15  ;;  %v1173_v37 = vsel %vm1008_vm1, %v1117_v23, 0.0 }
  0x8e   : > { %v3437_v38 = vadd.f32 %v351_v24, %v319_v6  ;;  %v350_v41 = vsub.f32 %v286_v8, %v318_v25  ;;  %v323_v42 = vmul.f32 8193.0, %v291_v26  ;;  %v1119_v45 = vmul.f32 %v3429_v27, %v3429_v27 }
  0x8f   : > { %v353_v46 = vsub.f32 %v289_v16, %v321_v28  ;;  %v3444_v50 = vadd.f32 %v352_v36, %v320_v15  ;;  %v324_v51 = vmul.f32 8193.0, %v292_v43  ;;  %v322_v52 = vmul.f32 8193.0, %v290_v44  ;;  %v294_v15 = vld [vmem:[%s3294_s8 + $0xb8] sm:$0xff] }
  0x90   : > { %v1170_v54 = vsel %vm1008_vm1, %v1116_v35, 0.0  ;;  %v1121_v56 = vmul.f32 %v3437_v38, %v3437_v38  ;;  %v3450_v58 = vadd.f32 %v350_v41, %v318_v25  ;;  %v355_v60 = vsub.f32 %v291_v26, %v323_v42 }
  0x91   : > { %1144 = vadd.xlane.f32.xlu0 %v1143_v48  ;;  %1156 = vadd.xlane.f32.xlu1 %v1155_v53  ;;  %v1176_v48 = vsel %vm1008_vm1, %v1118_v34, 0.0  ;;  %v293_v53 = vld [vmem:[%s3294_s8 + $0xb0] sm:$0xff]  ;;  %v3453_v62 = vadd.f32 %v353_v46, %v321_v28  ;;  %v1179_v1 = vsel %vm1008_vm1, %v1119_v45, 0.0  ;;  %v356_v4 = vsub.f32 %v292_v43, %v324_v51 }
  0x92   : > { %v325_v0 = vmul.f32 8193.0, %v293_v53  ;;  %v354_v6 = vsub.f32 %v290_v44, %v322_v52  ;;  %v1185_v7 = vsel %vm1008_vm1, %v1121_v56, 0.0  ;;  %v1120_v8 = vmul.f32 %v3450_v58, %v3450_v58  ;;  %v297_v28 = vld [vmem:[%s3294_s8 + $0xd0] sm:$0xff]  ;;  %v298_v56 = vld [vmem:[%s3294_s8 + $0xd8] sm:$0xff] }
  0x93   : > { %v3461_v9 = vadd.f32 %v355_v60, %v323_v42  ;;  %v1123_v16 = vmul.f32 %v3453_v62, %v3453_v62  ;;  %v3468_v24 = vadd.f32 %v356_v4, %v324_v51  ;;  %v326_v36 = vmul.f32 8193.0, %v294_v15 }
  0x94   : > { %v3470_v25 = vadd.f32 %v354_v6, %v322_v52  ;;  %v329_v42 = vmul.f32 8193.0, %v297_v28  ;;  %v330_v4 = vmul.f32 8193.0, %v298_v56  ;;  %v301_v6 = vld [vmem:[%s3294_s8 + $0xf0] sm:$0xff]  ;;  %vm1491_vm2 = vcmask 1041409  }
  0x95   : > { %1162 = vadd.xlane.f32.xlu0 %v1161_v61  ;;  %1165 = vadd.xlane.f32.xlu1 %v1164_v3  ;;  %v295_v61 = vld [vmem:[%s3294_s8 + $0xc0] sm:$0xff]  ;;  %v1122_v3 = vmul.f32 %v3444_v50, %v3444_v50  ;;  %v1125_v34 = vmul.f32 %v3461_v9, %v3461_v9  ;;  %v1191_v43 = vsel %vm1008_vm1, %v1123_v16, 0.0  ;;  %v1126_v44 = vmul.f32 %v3468_v24, %v3468_v24 }
  0x96   : > { %v327_v11 = vmul.f32 8193.0, %v295_v61  ;;  %v1124_v45 = vmul.f32 %v3470_v25, %v3470_v25  ;;  %v358_v52 = vsub.f32 %v294_v15, %v326_v36  ;;  %v302_v15 = vld [vmem:[%s3294_s8 + $0xf8] sm:$0xff]  ;;  %vm1493_vm3 = vcmask 1042434  }
  0x97   : > { %v1188_v23 = vsel %vm1008_vm1, %v1122_v3, 0.0  ;;  %vm1495_vm4 = vcmask 1043459   ;;  %vm1526_vm5 = vcmask 60416   ;;  %vm2194_vm6 = vcmask 1044484  }
  0x98   : > { %v359_v35 = vsub.f32 %v295_v61, %v327_v11  ;;  %v361_v61 = vsub.f32 %v297_v28, %v329_v42  ;;  %vm2196_vm7 = vcmask 1045509   ;;  %vm2198_vm8 = vcmask 1046534  }
  0x99   : > { %1147 = vadd.xlane.f32.xlu0 %v1146_v12  ;;  %1159 = vadd.xlane.f32.xlu1 %v1158_v22  ;;  %v296_v12 = vld [vmem:[%s3294_s8 + $0xc8] sm:$0xff]  ;;  %v357_v22 = vsub.f32 %v293_v53, %v325_v0  ;;  %vm2200_vm9 = vcmask 1047559   ;;  %vm2203_vm10 = vcmask 31744   ;;  %vm2366_vm11 = vcmask 7168  }
  0x9a   : > { %v328_v26 = vmul.f32 8193.0, %v296_v12  ;;  %v3485_v51 = vadd.f32 %v359_v35, %v327_v11  ;;  %v3498_v11 = vadd.f32 %v358_v52, %v326_v36  ;;  %v3501_v16 = vadd.f32 %v361_v61, %v329_v42  ;;  %v399_v42 = vld [vmem:[%s3301_s5] sm:$0xff] }
  0x9b   : > { %v3477_v41 = vadd.f32 %v357_v22, %v325_v0  ;;  %v1200_v0 = vsel %vm1008_vm1, %v1126_v44, 0.0  ;;  %v333_v22 = vmul.f32 8193.0, %v301_v6  ;;  %vm2582_vm12 = vcmask 15368  }
  0x9c   : > { %v360_v46 = vsub.f32 %v296_v12, %v328_v26  ;;  %v1128_v35 = vmul.f32 %v3498_v11, %v3498_v11  ;;  %v1131_v44 = vmul.f32 %v3501_v16, %v3501_v16 }
  0x9d   : > { %1168 = vadd.xlane.f32.xlu0 %v1167_v33  ;;  %1174 = vadd.xlane.f32.xlu1 %v1173_v37  ;;  %v1182_v33 = vsel %vm1008_vm1, %v1120_v8, 0.0  ;;  %v299_v37 = vld [vmem:[%s3294_s8 + $0xe0] sm:$0xff]  ;;  %v1127_v60 = vmul.f32 %v3477_v41, %v3477_v41  ;;  %v1129_v8 = vmul.f32 %v3485_v51, %v3485_v51 }
  0x9e   : > { %v331_v53 = vmul.f32 8193.0, %v299_v37 }
  0xa0   : > { %v363_v12 = vsub.f32 %v299_v37, %v331_v53  ;;  %v334_v37 = vmul.f32 8193.0, %v302_v15 }
  0xa1   : > { %1177 = vadd.xlane.f32.xlu0 %v1176_v48  ;;  %1171 = vadd.xlane.f32.xlu1 %v1170_v54  ;;  %v1197_v48 = vsel %vm1008_vm1, %v1125_v34, 0.0  ;;  %v300_v54 = vld [vmem:[%s3294_s8 + $0xe8] sm:$0xff]  ;;  %v1209_v34 = vsel %vm1008_vm1, %v1129_v8, 0.0 }
  0xa2   : > { %v332_v3 = vmul.f32 8193.0, %v300_v54  ;;  %v3509_v36 = vadd.f32 %v363_v12, %v331_v53  ;;  %v1206_v53 = vsel %vm1008_vm1, %v1128_v35, 0.0  ;;  %v366_v61 = vsub.f32 %v302_v15, %v334_v37 }
  0xa4   : > { %v364_v28 = vsub.f32 %v300_v54, %v332_v3  ;;  %v431_v54 = vmul.f32 8193.0, %v399_v42 }
  0xa5   : > { %1180 = vadd.xlane.f32.xlu0 %v1179_v1  ;;  %1186 = vadd.xlane.f32.xlu1 %v1185_v7  ;;  %v3492_v1 = vadd.f32 %v360_v46, %v328_v26  ;;  %v1194_v7 = vsel %vm1008_vm1, %v1124_v45, 0.0  ;;  %v365_v45 = vsub.f32 %v301_v6, %v333_v22  ;;  %v404_v6 = vld [vmem:[%s3301_s5 + $0x28] sm:$0xff] }
  0xa7   : > { %v1130_v26 = vmul.f32 %v3492_v1, %v3492_v1 }
  0xa9   : > { %1189 = vadd.xlane.f32.xlu0 %v1188_v23  ;;  %1183 = vadd.xlane.f32.xlu1 %v1182_v33  ;;  %v1203_v23 = vsel %vm1008_vm1, %v1127_v60, 0.0  ;;  %v362_v33 = vsub.f32 %v298_v56, %v330_v4  ;;  %v1212_v46 = vsel %vm1008_vm1, %v1130_v26, 0.0  ;;  %v403_v56 = vld [vmem:[%s3301_s5 + $0x20] sm:$0xff]  ;;  %v1133_v60 = vmul.f32 %v3509_v36, %v3509_v36 }
  0xaa   : > { %v435_v8 = vmul.f32 8193.0, %v403_v56  ;;  %v3533_v26 = vadd.f32 %v366_v61, %v334_v37 }
  0xab   : > { %v3518_v52 = vadd.f32 %v362_v33, %v330_v4  ;;  %v1221_v15 = vsel %vm1008_vm1, %v1133_v60, 0.0  ;;  %v401_v33 = vld [vmem:[%s3301_s5 + $0x10] sm:$0xff]  ;;  %v407_v60 = vld [vmem:[%s3301_s5 + $0x40] sm:$0xff] }
  0xac   : > { %4713 = vst [vmem:[#allocation12_spill] sm:$0xff] %v3533_v26 }
  0xad   : > { %1192 = vadd.xlane.f32.xlu0 %v1191_v43  ;;  %1198 = vadd.xlane.f32.xlu1 %v1197_v48  ;;  %v400_v43 = vld [vmem:[%s3301_s5 + $0x8] sm:$0xff]  ;;  %v3516_v48 = vadd.f32 %v364_v28, %v332_v3  ;;  %4711 = vst [vmem:[#allocation10_spill] sm:$0xff] %v3518_v52  ;;  %v1215_v3 = vsel %vm1008_vm1, %v1131_v44, 0.0  ;;  %v1132_v12 = vmul.f32 %v3518_v52, %v3518_v52 }
  0xae   : > { %v467_v44 = vsub.f32 %v403_v56, %v435_v8  ;;  %v408_v56 = vld [vmem:[%s3301_s5 + $0x48] sm:$0xff] }
  0xaf   : > { %v1134_v4 = vmul.f32 %v3516_v48, %v3516_v48  ;;  %v1218_v37 = vsel %vm1008_vm1, %v1132_v12, 0.0  ;;  %v440_v12 = vmul.f32 8193.0, %v408_v56 }
  0xb1   : > { %1201 = vadd.xlane.f32.xlu0 %v1200_v0  ;;  %1195 = vadd.xlane.f32.xlu1 %v1194_v7  ;;  %v432_v0 = vmul.f32 8193.0, %v400_v43  ;;  %v3525_v7 = vadd.f32 %v365_v45, %v333_v22  ;;  %v436_v22 = vmul.f32 8193.0, %v404_v6  ;;  %v1224_v45 = vsel %vm1008_vm1, %v1134_v4, 0.0 }
  0xb3   : > { %4712 = vst [vmem:[#allocation11_spill] sm:$0xff] %v3525_v7  ;;  %v464_v28 = vsub.f32 %v400_v43, %v432_v0  ;;  %v1135_v35 = vmul.f32 %v3525_v7, %v3525_v7  ;;  %v1136_v43 = vmul.f32 %v3533_v26, %v3533_v26  ;;  %v468_v49 = vsub.f32 %v404_v6, %v436_v22 }
  0xb5   : > { %1204 = vadd.xlane.f32.xlu0 %v1203_v23  ;;  %1210 = vadd.xlane.f32.xlu1 %v1209_v34  ;;  %v463_v23 = vsub.f32 %v399_v42, %v431_v54  ;;  %v405_v34 = vld [vmem:[%s3301_s5 + $0x30] sm:$0xff]  ;;  %v433_v42 = vmul.f32 8193.0, %v401_v33  ;;  %v3546_v61 = vadd.f32 %v464_v28, %v432_v0  ;;  %v1227_v52 = vsel %vm1008_vm1, %v1135_v35, 0.0  ;;  %v406_v28 = vld [vmem:[%s3301_s5 + $0x38] sm:$0xff] }
  0xb6   : > { %v1230_v26 = vsel %vm1008_vm1, %v1136_v43, 0.0  ;;  %v3557_v6 = vadd.f32 %v468_v49, %v436_v22 }
  0xb7   : > { %4715 = vst [vmem:[#allocation14_spill] sm:$0xff] %v3546_v61  ;;  %v465_v4 = vsub.f32 %v401_v33, %v433_v42  ;;  %v1712_v0 = vmul.f32 %v3546_v61, %v3546_v61  ;;  %v438_v61 = vmul.f32 8193.0, %v406_v28 }
  0xb8   : > { %4717 = vst [vmem:[#allocation16_spill] sm:$0xff] %v3557_v6  ;;  %v1716_v22 = vmul.f32 %v3557_v6, %v3557_v6 }
  0xb9   : > { %1213 = vadd.xlane.f32.xlu0 %v1212_v46  ;;  %1207 = vadd.xlane.f32.xlu1 %v1206_v53  ;;  %v3540_v46 = vadd.f32 %v463_v23, %v431_v54  ;;  %v437_v53 = vmul.f32 8193.0, %v405_v34  ;;  %v1746_v49 = vsel %vm1008_vm1, %v1712_v0, 0.0  ;;  %v470_v6 = vsub.f32 %v406_v28, %v438_v61 }
  0xbb   : > { %4714 = vst [vmem:[#allocation13_spill] sm:$0xff] %v3540_v46  ;;  %v1711_v54 = vmul.f32 %v3540_v46, %v3540_v46  ;;  %v469_v23 = vsub.f32 %v405_v34, %v437_v53  ;;  %v3564_v34 = vadd.f32 %v465_v4, %v433_v42  ;;  %v412_v4 = vld [vmem:[%s3301_s5 + $0x68] sm:$0xff]  ;;  %v415_v46 = vld [vmem:[%s3301_s5 + $0x80] sm:$0xff] }
  0xbc   : > { %v447_v7 = vmul.f32 8193.0, %v415_v46 }
  0xbd   : > { %1216 = vadd.xlane.f32.xlu0 %v1215_v3  ;;  %1222 = vadd.xlane.f32.xlu1 %v1221_v15  ;;  %v3549_v3 = vadd.f32 %v467_v44, %v435_v8  ;;  %v439_v15 = vmul.f32 8193.0, %v407_v60  ;;  %v402_v8 = vld [vmem:[%s3301_s5 + $0x18] sm:$0xff]  ;;  %v1743_v33 = vsel %vm1008_vm1, %v1711_v54, 0.0  ;;  %4718 = vst [vmem:[#allocation17_spill] sm:$0xff] %v3564_v34  ;;  %v3566_v35 = vadd.f32 %v469_v23, %v437_v53 }
  0xbe   : > { %v434_v43 = vmul.f32 8193.0, %v402_v8  ;;  %v1713_v42 = vmul.f32 %v3564_v34, %v3564_v34  ;;  %v1758_v23 = vsel %vm1008_vm1, %v1716_v22, 0.0  ;;  %v413_v34 = vld [vmem:[%s3301_s5 + $0x70] sm:$0xff]  ;;  %v3594_v22 = vadd.f32 %v470_v6, %v438_v61 }
  0xbf   : > { %4716 = vst [vmem:[#allocation15_spill] sm:$0xff] %v3549_v3  ;;  %v1715_v44 = vmul.f32 %v3549_v3, %v3549_v3  ;;  %4719 = vst [vmem:[#allocation18_spill] sm:$0xff] %v3566_v35  ;;  %v409_v3 = vld [vmem:[%s3301_s5 + $0x50] sm:$0xff]  ;;  %v1717_v53 = vmul.f32 %v3566_v35, %v3566_v35 }
  0xc0   : > { %v441_v54 = vmul.f32 8193.0, %v409_v3  ;;  %v466_v0 = vsub.f32 %v402_v8, %v434_v43  ;;  %4723 = vst [vmem:[#allocation22_spill] sm:$0xff] %v3594_v22  ;;  %v1718_v61 = vmul.f32 %v3594_v22, %v3594_v22  ;;  %v420_v22 = vld [vmem:[%s3301_s5 + $0xa8] sm:$0xff] }
  0xc1   : > { %1225 = vadd.xlane.f32.xlu0 %v1224_v45  ;;  %1219 = vadd.xlane.f32.xlu1 %v1218_v37  ;;  %v471_v45 = vsub.f32 %v407_v60, %v439_v15  ;;  %v472_v37 = vsub.f32 %v408_v56, %v440_v12  ;;  %v411_v60 = vld [vmem:[%s3301_s5 + $0x60] sm:$0xff] }
  0xc2   : > { %v3592_v28 = vadd.f32 %v466_v0, %v434_v43 }
  0xc3   : > { %v3580_v56 = vadd.f32 %v472_v37, %v440_v12  ;;  %v1761_v12 = vsel %vm1008_vm1, %v1717_v53, 0.0  ;;  %v473_v37 = vsub.f32 %v409_v3, %v441_v54 }
  0xc4   : > { %4722 = vst [vmem:[#allocation21_spill] sm:$0xff] %v3592_v28  ;;  %v1714_v43 = vmul.f32 %v3592_v28, %v3592_v28  ;;  %v418_v28 = vld [vmem:[%s3301_s5 + $0x98] sm:$0xff] }
  0xc5   : > { %1228 = vadd.xlane.f32.xlu0 %v1227_v52  ;;  %1231 = vadd.xlane.f32.xlu1 %v1230_v26  ;;  %v1755_v52 = vsel %vm1008_vm1, %v1715_v44, 0.0  ;;  %v3574_v26 = vadd.f32 %v471_v45, %v439_v15  ;;  %4721 = vst [vmem:[#allocation20_spill] sm:$0xff] %v3580_v56  ;;  %v443_v15 = vmul.f32 8193.0, %v411_v60  ;;  %v410_v44 = vld [vmem:[%s3301_s5 + $0x58] sm:$0xff]  ;;  %v1720_v8 = vmul.f32 %v3580_v56, %v3580_v56 }
  0xc6   : > { %v442_v35 = vmul.f32 8193.0, %v410_v44  ;;  %v3598_v3 = vadd.f32 %v473_v37, %v441_v54  ;;  %v1752_v37 = vsel %vm1008_vm1, %v1714_v43, 0.0 }
  0xc7   : > { %4720 = vst [vmem:[#allocation19_spill] sm:$0xff] %v3574_v26  ;;  %v1719_v45 = vmul.f32 %v3574_v26, %v3574_v26  ;;  %v475_v26 = vsub.f32 %v411_v60, %v443_v15  ;;  %v1770_v56 = vsel %vm1008_vm1, %v1720_v8, 0.0  ;;  %v416_v60 = vld [vmem:[%s3301_s5 + $0x88] sm:$0xff]  ;;  %v419_v8 = vld [vmem:[%s3301_s5 + $0xa0] sm:$0xff] }
  0xc8   : > { %4724 = vst [vmem:[#allocation23_spill] sm:$0xff] %v3598_v3  ;;  %v474_v53 = vsub.f32 %v410_v44, %v442_v35  ;;  %v1721_v44 = vmul.f32 %v3598_v3, %v3598_v3  ;;  %v451_v3 = vmul.f32 8193.0, %v419_v8 }
  0xc9   : > { %1744 = vadd.xlane.f32.xlu0 %v1743_v33  ;;  %1747 = vadd.xlane.f32.xlu1 %v1746_v49  ;;  %v444_v33 = vmul.f32 8193.0, %v412_v4  ;;  %v1749_v49 = vsel %vm1008_vm1, %v1713_v42, 0.0  ;;  %v1767_v42 = vsel %vm1008_vm1, %v1719_v45, 0.0  ;;  %v3605_v6 = vadd.f32 %v475_v26, %v443_v15 }
  0xca   : > { %v3613_v45 = vadd.f32 %v474_v53, %v442_v35  ;;  %v1764_v26 = vsel %vm1008_vm1, %v1718_v61, 0.0  ;;  %v1773_v43 = vsel %vm1008_vm1, %v1721_v44, 0.0 }
  0xcb   : > { %4725 = vst [vmem:[#allocation24_spill] sm:$0xff] %v3605_v6  ;;  %v1723_v15 = vmul.f32 %v3605_v6, %v3605_v6 }
  0xcd   : > { %1756 = vadd.xlane.f32.xlu0 %v1755_v52  ;;  %1759 = vadd.xlane.f32.xlu1 %v1758_v23  ;;  %v476_v52 = vsub.f32 %v412_v4, %v444_v33  ;;  %v445_v23 = vmul.f32 8193.0, %v413_v34  ;;  %v414_v4 = vld [vmem:[%s3301_s5 + $0x78] sm:$0xff]  ;;  %v1779_v61 = vsel %vm1008_vm1, %v1723_v15, 0.0  ;;  %v450_v15 = vmul.f32 8193.0, %v418_v28 }
  0xcf   : > { %v3609_v0 = vadd.f32 %v476_v52, %v444_v33  ;;  %v477_v54 = vsub.f32 %v413_v34, %v445_v23  ;;  %v446_v33 = vmul.f32 8193.0, %v414_v4  ;;  %v417_v34 = vld [vmem:[%s3301_s5 + $0x90] sm:$0xff] }
  0xd0   : > { %v449_v53 = vmul.f32 8193.0, %v417_v34 }
  0xd1   : > { %1750 = vadd.xlane.f32.xlu0 %v1749_v49  ;;  %1762 = vadd.xlane.f32.xlu1 %v1761_v12  ;;  %v479_v49 = vsub.f32 %v415_v46, %v447_v7  ;;  %v448_v12 = vmul.f32 8193.0, %v416_v60  ;;  %v3623_v52 = vadd.f32 %v477_v54, %v445_v23  ;;  %v1722_v46 = vmul.f32 %v3613_v45, %v3613_v45 }
  0xd2   : > { %v478_v6 = vsub.f32 %v414_v4, %v446_v33  ;;  %v481_v44 = vsub.f32 %v417_v34, %v449_v53  ;;  %v483_v4 = vsub.f32 %v419_v8, %v451_v3 }
  0xd3   : > { %v3627_v35 = vadd.f32 %v479_v49, %v447_v7  ;;  %v1725_v54 = vmul.f32 %v3623_v52, %v3623_v52  ;;  %v1776_v7 = vsel %vm1008_vm1, %v1722_v46, 0.0 }
  0xd4   : > { %v3651_v34 = vadd.f32 %v483_v4, %v451_v3 }
  0xd5   : > { %1768 = vadd.xlane.f32.xlu0 %v1767_v42  ;;  %1771 = vadd.xlane.f32.xlu1 %v1770_v56  ;;  %v1724_v56 = vmul.f32 %v3609_v0, %v3609_v0  ;;  %v480_v42 = vsub.f32 %v416_v60, %v448_v12  ;;  %v1727_v60 = vmul.f32 %v3627_v35, %v3627_v35 }
  0xd6   : > { %4729 = vst [vmem:[#allocation28_spill] sm:$0xff] %v3651_v34 }
  0xd7   : > { %v1782_v23 = vsel %vm1008_vm1, %v1724_v56, 0.0  ;;  %v3639_v49 = vadd.f32 %v480_v42, %v448_v12  ;;  %v1785_v56 = vsel %vm1008_vm1, %v1725_v54, 0.0 }
  0xd9   : > { %1753 = vadd.xlane.f32.xlu0 %v1752_v37  ;;  %1765 = vadd.xlane.f32.xlu1 %v1764_v26  ;;  %4726 = vst [vmem:[#allocation25_spill] sm:$0xff] %v3639_v49  ;;  %v3641_v37 = vadd.f32 %v478_v6, %v446_v33  ;;  %v452_v26 = vmul.f32 8193.0, %v420_v22  ;;  %v1728_v46 = vmul.f32 %v3639_v49, %v3639_v49 }
  0xda   : > { %v482_v33 = vsub.f32 %v418_v28, %v450_v15 }
  0xdb   : > { %4727 = vst [vmem:[#allocation26_spill] sm:$0xff] %v3641_v37  ;;  %v1726_v12 = vmul.f32 %v3641_v37, %v3641_v37  ;;  %v484_v6 = vsub.f32 %v420_v22, %v452_v26  ;;  %v1794_v8 = vsel %vm1008_vm1, %v1728_v46, 0.0 }
  0xdd   : > { %1774 = vadd.xlane.f32.xlu0 %v1773_v43  ;;  %1780 = vadd.xlane.f32.xlu1 %v1779_v61  ;;  %v1791_v43 = vsel %vm1008_vm1, %v1727_v60, 0.0  ;;  %v3647_v61 = vadd.f32 %v481_v44, %v449_v53  ;;  %v1731_v53 = vmul.f32 %v3651_v34, %v3651_v34  ;;  %v3659_v54 = vadd.f32 %v484_v6, %v452_v26 }
  0xdf   : > { %4728 = vst [vmem:[#allocation27_spill] sm:$0xff] %v3647_v61  ;;  %v1729_v42 = vmul.f32 %v3647_v61, %v3647_v61  ;;  %4730 = vst [vmem:[#allocation29_spill] sm:$0xff] %v3659_v54  ;;  %v1803_v22 = vsel %vm1008_vm1, %v1731_v53, 0.0  ;;  %v1732_v3 = vmul.f32 %v3659_v54, %v3659_v54 }
  0xe1   : > { %1783 = vadd.xlane.f32.xlu0 %v1782_v23  ;;  %1777 = vadd.xlane.f32.xlu1 %v1776_v7  ;;  %v1788_v23 = vsel %vm1008_vm1, %v1726_v12, 0.0  ;;  %v3661_v7 = vadd.f32 %v482_v33, %v450_v15  ;;  %v1797_v28 = vsel %vm1008_vm1, %v1729_v42, 0.0  ;;  %v1806_v44 = vsel %vm1008_vm1, %v1732_v3, 0.0 }
  0xe3   : > { %4731 = vst [vmem:[#allocation30_spill] sm:$0xff] %v3661_v7  ;;  %v1730_v60 = vmul.f32 %v3661_v7, %v3661_v7 }
  0xe5   : > { %1786 = vadd.xlane.f32.xlu0 %v1785_v56  ;;  %1792 = vadd.xlane.f32.xlu1 %v1791_v43  ;;  %v1800_v4 = vsel %vm1008_vm1, %v1730_v60, 0.0 }
  0xe9   : > { %1795 = vadd.xlane.f32.xlu0 %v1794_v8  ;;  %1789 = vadd.xlane.f32.xlu1 %v1788_v23  ;;  %v3093_v8 = vmov 1966171168   ;;  %v4691_v23 = vlaneseq }
  0xea   : > { %v625_v42 = vunpack.c.l.s4 %v3093_v8 }
  0xec   : > { %v626_v60 = vunpack.c.0.s8 %v625_v42 }
  0xed   : > { %1798 = vadd.xlane.f32.xlu0 %v1797_v28  ;;  %1804 = vadd.xlane.f32.xlu1 %v1803_v22 }
  0xf1   : > { %1807 = vadd.xlane.f32.xlu0 %v1806_v44  ;;  %1801 = vadd.xlane.f32.xlu1 %v1800_v4  ;;  %v3672_v44 = vshrl.u32 %v4691_v23, 7 }
  0xf3   : > { %4732 = vst [vmem:[#allocation31_spill] sm:$0xff] %v3672_v44 }
 0x106   : > { %v576_v26 = vpop.xlane.xlu1 %575  ;;  %v570_v15 = vpop.xlane.xlu0 %569 }
 0x107   : > { %v594_v56 = vmax.f32 %v576_v26, 1e-24  ;;  %v592_v43 = vmax.f32 %v570_v15, 1e-24 }
 0x109   : > { %2776 = vrsqrt.f32 %v594_v56 }
 0x10a   : > { %2778 = vrsqrt.f32 %v592_v43  ;;  %v579_v46 = vpop.xlane.xlu1 %578  ;;  %v573_v12 = vpop.xlane.xlu0 %572 }
 0x10b   : > { %v595_v6 = vmax.f32 %v579_v46, 1e-24  ;;  %v593_v33 = vmax.f32 %v573_v12, 1e-24  ;;  %v3675_v46 = vsub.s32 %v626_v60, %v3672_v44  ;;  %v3701_v60 = vsub.s32 0, %v3672_v44 }
 0x10d   : > { %2780 = vrsqrt.f32 %v595_v6  ;;  %4735 = vst [vmem:[#allocation34_spill] sm:$0xff] %v3701_v60 }
 0x10e   : > { %2782 = vrsqrt.f32 %v593_v33  ;;  %v582_v53 = vpop.xlane.xlu0 %581  ;;  %v585_v28 = vpop.xlane.xlu1 %584 }
 0x10f   : > { %v596_v22 = vmax.f32 %v582_v53, 1e-24  ;;  %v597_v3 = vmax.f32 %v585_v28, 1e-24 }
 0x111   : > { %2784 = vrsqrt.f32 %v596_v22 }
 0x112   : > { %2786 = vrsqrt.f32 %v597_v3  ;;  %v588_v4 = vpop.xlane.xlu0 %587  ;;  %v591_v26 = vpop.xlane.xlu1 %590 }
 0x113   : > { %v2777_v15 = vpop.eup %2776  ;;  %v598_v56 = vmax.f32 %v588_v4, 1e-24  ;;  %v599_v43 = vmax.f32 %v591_v26, 1e-24 }
 0x114   : > { %v2779_v12 = vpop.eup %2778  ;;  %v3678_v6 = vmul.f32 %v2777_v15, %v3307_v18 }
 0x115   : > { %2788 = vrsqrt.f32 %v598_v56  ;;  %v3681_v33 = vmul.f32 %v2779_v12, %v3309_v19 }
 0x116   : > { %2790 = vrsqrt.f32 %v599_v43  ;;  %v3685_v8 = vrot.slane %v3678_v6, %v3675_v46  ;;  %v3687_v42 = vpop.xlane.xlu0 %1138  ;;  %v3689_v53 = vpop.xlane.xlu1 %1141 }
 0x117   : > { %4733 = vst [vmem:[#allocation32_spill] sm:$0xff] %v3687_v42  ;;  %4734 = vst [vmem:[#allocation33_spill] sm:$0xff] %v3689_v53  ;;  %v2781_v28 = vpop.eup %2780  ;;  %v3693_v22 = vrot.slane %v3681_v33, %v3675_v46 }
 0x118   : > { %v2783_v18 = vpop.eup %2782  ;;  %v3696_v3 = vmul.f32 %v2781_v28, %v3311_v20  ;;  %v686_v26 = vrot.slane %v3685_v8, %v3675_v46 }
 0x119   : > { %v638_v19 = vrot.slane %v3693_v22, %v3675_v46  ;;  %v3704_v4 = vmul.f32 %v2783_v18, %v3319_v29 }
 0x11a   : > { %v702_v15 = vrot.slane %v3696_v3, %v3675_v46  ;;  %v3710_v56 = vpop.xlane.xlu0 %1150  ;;  %v3712_v43 = vpop.xlane.xlu1 %1153 }
 0x11b   : > { %4736 = vst [vmem:[#allocation35_spill] sm:$0xff] %v3710_v56  ;;  %4737 = vst [vmem:[#allocation36_spill] sm:$0xff] %v3712_v43  ;;  %v2785_v20 = vpop.eup %2784  ;;  %v819_v12 = vrot.slane %v638_v19, %v3701_v60  ;;  %v3717_v28 = vrot.slane %v3704_v4, %v3675_v46  ;;  %v851_v56 = vrot.slane %v686_v26, %v3701_v60 }
 0x11c   : > { %v2787_v23 = vpop.eup %2786  ;;  %v3720_v29 = vrot.slane %v702_v15, %v3675_v46  ;;  %v3723_v18 = vmul.f32 %v2785_v20, %v3322_v31  ;;  %v646_v31 = vcombine.high %v638_v19, %v638_v19 }
 0x11d   : > { %v976_v44 = vmul.f32 %v819_v12, %v3348_v57  ;;  %v3728_v53 = vrot.slane %v3717_v28, %v3675_v46  ;;  %v3732_v43 = vmul.f32 %v2787_v23, %v3324_v32  ;;  %v984_v37 = vmul.f32 %v851_v56, %v3381_v30 }
 0x11e   : > { %v867_v42 = vrot.slane %v3720_v29, %v3701_v60  ;;  %v3738_v7 = vrot.slane %v3723_v18, %v3675_v46  ;;  %v3740_v20 = vpop.xlane.xlu0 %1144  ;;  %v3742_v57 = vpop.xlane.xlu1 %1156  ;;  %v703_v56 = vcombine.high %v702_v15, %v702_v15 }
 0x11f   : > { %4738 = vst [vmem:[#allocation37_spill] sm:$0xff] %v3740_v20  ;;  %4739 = vst [vmem:[#allocation38_spill] sm:$0xff] %v3742_v57  ;;  %v2789_v12 = vpop.eup %2788  ;;  %v1009_v54 = vsel %vm1008_vm1, %v976_v44, 0.0  ;;  %v835_v34 = vrot.slane %v3728_v53, %v3701_v60  ;;  %v3749_v32 = vrot.slane %v3732_v43, %v3675_v46  ;;  %v694_v57 = vcombine.high %v686_v26, %v686_v26 }
 0x120   : > { %v2791_v23 = vpop.eup %2790  ;;  %1010 = vadd.xlane.f32.xlu0 %v1009_v54  ;;  %v988_v61 = vmul.f32 %v867_v42, %v3413_v5  ;;  %v3754_v19 = vrot.slane %v3738_v7, %v3675_v46  ;;  %v3757_v20 = vmul.f32 %v2789_v12, %v3332_v39  ;;  %v827_v39 = vrot.slane %v646_v31, %v3701_v60 }
 0x121   : > { %v980_v44 = vmul.f32 %v835_v34, %v3357_v2  ;;  %v3763_v49 = vrot.slane %v3749_v32, %v3675_v46  ;;  %v3766_v54 = vmul.f32 %v2791_v23, %v3342_v47  ;;  %v1033_v23 = vsel %vm1008_vm1, %v984_v37, 0.0 }
 0x122   : > { %v1045_v5 = vsel %vm1008_vm1, %v988_v61, 0.0  ;;  %v883_v42 = vrot.slane %v3754_v19, %v3701_v60  ;;  %v3774_v26 = vrot.slane %v3757_v20, %v3675_v46  ;;  %v3776_v2 = vpop.xlane.xlu0 %1162  ;;  %v3778_v30 = vpop.xlane.xlu1 %1165  ;;  %v978_v37 = vmul.f32 %v827_v39, %v3372_v17 }
 0x123   : > { %4740 = vst [vmem:[#allocation39_spill] sm:$0xff] %v3776_v2  ;;  %4741 = vst [vmem:[#allocation40_spill] sm:$0xff] %v3778_v30  ;;  %1046 = vadd.xlane.f32.xlu1 %v1045_v5  ;;  %v1021_v34 = vsel %vm1008_vm1, %v980_v44, 0.0  ;;  %v899_v47 = vrot.slane %v3763_v49, %v3701_v60  ;;  %v3785_v61 = vrot.slane %v3766_v54, %v3675_v46 }
 0x124   : > { %1022 = vadd.xlane.f32.xlu0 %v1021_v34  ;;  %v992_v31 = vmul.f32 %v883_v42, %v3437_v38  ;;  %v3790_v12 = vrot.slane %v3774_v26, %v3675_v46  ;;  %v631_v38 = vcombine.high %v3693_v22, %v3693_v22  ;;  %v655_v17 = vcombine.high %v3717_v28, %v3717_v28 }
 0x125   : > { %v996_v5 = vmul.f32 %v899_v47, %v3461_v9  ;;  %v3796_v44 = vrot.slane %v3785_v61, %v3675_v46  ;;  %v859_v9 = vrot.slane %v694_v57, %v3701_v60  ;;  %v3810_v47 = vrot.slane %v703_v56, %v3675_v46 }
 0x126   : > { %v1057_v30 = vsel %vm1008_vm1, %v992_v31, 0.0  ;;  %v915_v15 = vrot.slane %v3790_v12, %v3701_v60  ;;  %v3803_v42 = vpop.xlane.xlu0 %1147  ;;  %v3805_v34 = vpop.xlane.xlu1 %1159  ;;  %v1015_v39 = vsel %vm1008_vm1, %v978_v37, 0.0 }
 0x127   : > { %4742 = vst [vmem:[#allocation41_spill] sm:$0xff] %v3803_v42  ;;  %1058 = vadd.xlane.f32.xlu1 %v1057_v30  ;;  %v1069_v31 = vsel %vm1008_vm1, %v996_v5, 0.0  ;;  %v931_v22 = vrot.slane %v3796_v44, %v3701_v60  ;;  %v3817_v42 = vrot.slane %v631_v38, %v3675_v46  ;;  %v718_v30 = vcombine.high %v3720_v29, %v3720_v29 }
 0x128   : > { %1034 = vadd.xlane.f32.xlu0 %v1033_v23  ;;  %v1000_v2 = vmul.f32 %v915_v15, %v3485_v51  ;;  %v986_v56 = vmul.f32 %v859_v9, %v3405_v59  ;;  %v871_v51 = vrot.slane %v3810_v47, %v3701_v60  ;;  %v727_v23 = vcombine.high %v3738_v7, %v3738_v7 }
 0x129   : > { %v1004_v29 = vmul.f32 %v931_v22, %v3509_v36  ;;  %v823_v28 = vrot.slane %v3817_v42, %v3701_v60  ;;  %v875_v38 = vrot.slane %v718_v30, %v3701_v60  ;;  %v669_v59 = vrot.slane %v655_v17, %v3675_v46 }
 0x12a   : > { %v3823_v57 = vpop.xlane.xlu0 %1168  ;;  %v1081_v5 = vsel %vm1008_vm1, %v1000_v2, 0.0  ;;  %v3833_v15 = vpop.xlane.xlu1 %1174  ;;  %v1039_v37 = vsel %vm1008_vm1, %v986_v56, 0.0  ;;  %v989_v9 = vmul.f32 %v871_v51, %v3420_v13  ;;  %v3842_v7 = vrot.slane %v727_v23, %v3675_v46 }
 0x12b   : > { %1070 = vadd.xlane.f32.xlu1 %v1069_v31  ;;  %v1093_v36 = vsel %vm1008_vm1, %v1004_v29, 0.0  ;;  %v679_v31 = vcombine.high %v3685_v8, %v3685_v8  ;;  %v977_v22 = vmul.f32 %v823_v28, %v3354_v63  ;;  %v990_v30 = vmul.f32 %v875_v38, %v3429_v27 }
 0x12c   : > { %1016 = vadd.xlane.f32.xlu0 %v1015_v39  ;;  %v839_v17 = vrot.slane %v669_v59, %v3701_v60  ;;  %v670_v13 = vcombine.high %v3728_v53, %v3728_v53  ;;  %v1048_v56 = vsel %vm1008_vm1, %v989_v9, 0.0  ;;  %v887_v51 = vrot.slane %v3842_v7, %v3701_v60 }
 0x12d   : > { %v742_v8 = vcombine.high %v3754_v19, %v3754_v19  ;;  %v751_v63 = vcombine.high %v3749_v32, %v3749_v32  ;;  %v693_v27 = vrot.slane %v679_v31, %v3675_v46  ;;  %v1012_v53 = vsel %vm1008_vm1, %v977_v22, 0.0 }
 0x12e   : > { %v3844_v2 = vpop.xlane.xlu0 %1177  ;;  %v3854_v39 = vpop.xlane.xlu1 %1171  ;;  %v843_v29 = vrot.slane %v670_v13, %v3701_v60  ;;  %v1051_v28 = vsel %vm1008_vm1, %v990_v30, 0.0  ;;  %v993_v38 = vmul.f32 %v887_v51, %v3444_v50  ;;  %v671_v31 = vcombine.high %v669_v59, %v669_v59 }
 0x12f   : > { %1082 = vadd.xlane.f32.xlu1 %v1081_v5  ;;  %v981_v5 = vmul.f32 %v839_v17, %v3365_v10  ;;  %v891_v19 = vrot.slane %v742_v8, %v3701_v60  ;;  %v3873_v32 = vrot.slane %v751_v63, %v3675_v46  ;;  %v855_v9 = vrot.slane %v693_v27, %v3701_v60 }
 0x130   : > { %1040 = vadd.xlane.f32.xlu0 %v1039_v37  ;;  %v982_v10 = vmul.f32 %v843_v29, %v3374_v21  ;;  %v766_v22 = vcombine.high %v3763_v49, %v3763_v49  ;;  %v1060_v50 = vsel %vm1008_vm1, %v993_v38, 0.0  ;;  %v775_v13 = vcombine.high %v3774_v26, %v3774_v26 }
 0x131   : > { %v994_v30 = vmul.f32 %v891_v19, %v3453_v62  ;;  %v903_v17 = vrot.slane %v3873_v32, %v3701_v60  ;;  %v985_v21 = vmul.f32 %v855_v9, %v3389_v40  ;;  %v847_v49 = vrot.slane %v671_v31, %v3701_v60 }
 0x132   : > { %v3864_v23 = vpop.xlane.xlu0 %1180  ;;  %v3875_v37 = vpop.xlane.xlu1 %1186  ;;  %v1027_v59 = vsel %vm1008_vm1, %v982_v10, 0.0  ;;  %v907_v51 = vrot.slane %v766_v22, %v3701_v60  ;;  %v695_v8 = vcombine.high %v693_v27, %v693_v27  ;;  %v3899_v26 = vrot.slane %v775_v13, %v3675_v46  ;;  %v3924_v22 = vld [vmem:[%s3301_s5 + $0xb0] sm:$0xff]  ;;  %v424_v13 = vld [vmem:[%s3301_s5 + $0xc8] sm:$0xff] }
 0x133   : > { %1094 = vadd.xlane.f32.xlu1 %v1093_v36  ;;  %v1024_v36 = vsel %vm1008_vm1, %v981_v5, 0.0  ;;  %v1063_v62 = vsel %vm1008_vm1, %v994_v30, 0.0  ;;  %v1036_v40 = vsel %vm1008_vm1, %v985_v21, 0.0  ;;  %v983_v29 = vmul.f32 %v847_v49, %v3402_v55  ;;  %v422_v21 = vld [vmem:[%s3301_s5 + $0xb8] sm:$0xff] }
 0x134   : > { %1049 = vadd.xlane.f32.xlu0 %v1048_v56  ;;  %v998_v27 = vmul.f32 %v907_v51, %v3477_v41  ;;  %v719_v38 = vcombine.high %v3810_v47, %v3810_v47  ;;  %v919_v19 = vrot.slane %v3899_v26, %v3701_v60  ;;  %v790_v9 = vcombine.high %v3790_v12, %v3790_v12 }
 0x135   : > { %v1030_v41 = vsel %vm1008_vm1, %v983_v29, 0.0  ;;  %v743_v31 = vcombine.high %v3842_v7, %v3842_v7  ;;  %v423_v7 = vld [vmem:[%s3301_s5 + $0xc0] sm:$0xff]  ;;  %v814_v29 = vcombine.high %v3796_v44, %v3796_v44 }
 0x136   : > { %v3888_v56 = vpop.xlane.xlu0 %1189  ;;  %v3894_v63 = vpop.xlane.xlu1 %1183  ;;  %v879_v10 = vrot.slane %v719_v38, %v3701_v60  ;;  %v1001_v12 = vmul.f32 %v919_v19, %v3492_v1  ;;  %v767_v1 = vcombine.high %v3873_v32, %v3873_v32  ;;  %v455_v32 = vmul.f32 8193.0, %v423_v7  ;;  %v427_v19 = vld [vmem:[%s3301_s5 + $0xe0] sm:$0xff] }
 0x137   : > { %1013 = vadd.xlane.f32.xlu1 %v1012_v53  ;;  %4743 = vst [vmem:[#allocation42_spill] sm:$0xff] %v3888_v56  ;;  %v997_v53 = vmul.f32 %v903_v17, %v3468_v24  ;;  %v453_v17 = vmul.f32 8193.0, %v3924_v22  ;;  %v895_v51 = vrot.slane %v743_v31, %v3701_v60  ;;  %v429_v31 = vld [vmem:[%s3301_s5 + $0xf0] sm:$0xff] }
 0x138   : > { %1052 = vadd.xlane.f32.xlu0 %v1051_v28  ;;  %v863_v28 = vrot.slane %v695_v8, %v3701_v60  ;;  %v991_v49 = vmul.f32 %v879_v10, %v3450_v58  ;;  %v911_v44 = vrot.slane %v767_v1, %v3701_v60  ;;  %v791_v10 = vcombine.high %v3899_v26, %v3899_v26 }
 0x139   : > { %v1072_v24 = vsel %vm1008_vm1, %v997_v53, 0.0  ;;  %v1084_v53 = vsel %vm1008_vm1, %v1001_v12, 0.0  ;;  %v485_v38 = vsub.f32 %v3924_v22, %v453_v17  ;;  %v939_v12 = vrot.slane %v814_v29, %v3701_v60 }
 0x13a   : > { %v3902_v5 = vpop.xlane.xlu0 %1192  ;;  %v3916_v55 = vpop.xlane.xlu1 %1198  ;;  %v987_v47 = vmul.f32 %v863_v28, %v3422_v14  ;;  %v454_v28 = vmul.f32 8193.0, %v422_v21  ;;  %v927_v29 = vrot.slane %v791_v10, %v3701_v60 }
 0x13b   : > { %1025 = vadd.xlane.f32.xlu1 %v1024_v36  ;;  %4744 = vst [vmem:[#allocation43_spill] sm:$0xff] %v3902_v5  ;;  %v799_v36 = vcombine.high %v3785_v61, %v3785_v61  ;;  %v1075_v61 = vsel %vm1008_vm1, %v998_v27, 0.0  ;;  %v456_v27 = vmul.f32 8193.0, %v424_v13 }
 0x13c   : > { %1061 = vadd.xlane.f32.xlu0 %v1060_v50  ;;  %v923_v50 = vrot.slane %v790_v9, %v3701_v60  ;;  %v428_v9 = vld [vmem:[%s3301_s5 + $0xe8] sm:$0xff] }
 0x13d   : > { %v3930_v30 = vrot.slane %v799_v36, %v3675_v46  ;;  %v425_v46 = vld [vmem:[%s3301_s5 + $0xd0] sm:$0xff]  ;;  %v488_v26 = vsub.f32 %v424_v13, %v456_v27 }
 0x13e   : > { %v3932_v14 = vpop.xlane.xlu0 %1201  ;;  %v3944_v8 = vpop.xlane.xlu1 %1195 }
 0x13f   : > { %1028 = vadd.xlane.f32.xlu1 %v1027_v59  ;;  %v1042_v59 = vsel %vm1008_vm1, %v987_v47, 0.0  ;;  %4745 = vst [vmem:[#allocation44_spill] sm:$0xff] %v3944_v8  ;;  %v935_v58 = vrot.slane %v3930_v30, %v3701_v60  ;;  %v995_v47 = vmul.f32 %v895_v51, %v3470_v25  ;;  %v459_v25 = vmul.f32 8193.0, %v427_v19 }
 0x140   : > { %1064 = vadd.xlane.f32.xlu0 %v1063_v62  ;;  %v3947_v62 = vld [vmem:[%s3301_s5 + $0xd8] sm:$0xff]  ;;  %v460_v51 = vmul.f32 8193.0, %v428_v9  ;;  %v520_v10 = vadd.f32 %v488_v26, %v456_v27 }
 0x141   : > { %v491_v5 = vsub.f32 %v427_v19, %v459_v25 }
 0x142   : > { %v3958_v36 = vpop.xlane.xlu0 %1204  ;;  %v3972_v1 = vpop.xlane.xlu1 %1210 }
 0x143   : > { %1037 = vadd.xlane.f32.xlu1 %v1036_v40  ;;  %v1002_v40 = vmul.f32 %v923_v50, %v3501_v16  ;;  %v458_v16 = vmul.f32 8193.0, %v3947_v62  ;;  %v647_v50 = vcombine.high %v3817_v42, %v3817_v42  ;;  %4746 = vst [vmem:[#allocation45_spill] sm:$0xff] %v3972_v1  ;;  %v815_v42 = vcombine.high %v3930_v30, %v3930_v30 }
 0x144   : > { %1073 = vadd.xlane.f32.xlu0 %v1072_v24  ;;  %v457_v24 = vmul.f32 8193.0, %v425_v46  ;;  %v517_v1 = vadd.f32 %v485_v38, %v453_v17  ;;  %v3988_v30 = vrot.slane %v3732_v43, %v3701_v60  ;;  %v523_v19 = vadd.f32 %v491_v5, %v459_v25  ;;  %v4751_v5 = vld [vmem:[#allocation12_spill] sm:$0xff] }
 0x145   : > { %v1087_v22 = vsel %vm1008_vm1, %v1002_v40, 0.0  ;;  %v461_v40 = vmul.f32 8193.0, %v429_v31  ;;  %v831_v13 = vrot.slane %v647_v50, %v3701_v60  ;;  %v943_v50 = vrot.slane %v815_v42, %v3701_v60 }
 0x146   : > { %v489_v8 = vsub.f32 %v425_v46, %v457_v24  ;;  %v3984_v46 = vpop.xlane.xlu0 %1213  ;;  %v1736_v42 = vmul.f32 %v520_v10, %v520_v10 }
 0x147   : > { %1031 = vadd.xlane.f32.xlu1 %v1030_v41  ;;  %v1054_v41 = vsel %vm1008_vm1, %v991_v49, 0.0  ;;  %v486_v49 = vsub.f32 %v422_v21, %v454_v28  ;;  %v4747_v21 = vld [vmem:[#allocation11_spill] sm:$0xff]  ;;  %v493_v56 = vsub.f32 %v429_v31, %v461_v40  ;;  %v1578_v31 = vrot.slane %v3757_v20, %v3701_v60 }
 0x148   : > { %1076 = vadd.xlane.f32.xlu0 %v1075_v61  ;;  %v1005_v61 = vmul.f32 %v935_v58, %v3516_v48  ;;  %v1066_v48 = vsel %vm1008_vm1, %v995_v47, 0.0  ;;  %v999_v58 = vmul.f32 %v911_v44, %v3498_v11  ;;  %4748 = vst [vmem:[#allocation11_spill] sm:$0xff] %v3984_v46  ;;  %v492_v11 = vsub.f32 %v428_v9, %v460_v51  ;;  %v3993_v46 = vpop.xlane.xlu1 %1207 }
 0x149   : > { %v518_v47 = vadd.f32 %v486_v49, %v454_v28  ;;  %v4750_v28 = vld [vmem:[#allocation9_spill] sm:$0xff]  ;;  %v3998_v9 = vmul.f32 %v3988_v30, %v517_v1  ;;  %v1007_v25 = vmul.f32 %v943_v50, %v4751_v5 }
 0x14a   : > { %v524_v43 = vadd.f32 %v492_v11, %v460_v51 }
 0x14b   : > { %1043 = vadd.xlane.f32.xlu1 %v1042_v59  ;;  %v487_v59 = vsub.f32 %v423_v7, %v455_v32  ;;  %v1096_v7 = vsel %vm1008_vm1, %v1005_v61, 0.0  ;;  %v1078_v61 = vsel %vm1008_vm1, %v999_v58, 0.0  ;;  %v4005_v49 = vmul.f32 %v3988_v30, %v518_v47 }
 0x14c   : > { %1085 = vadd.xlane.f32.xlu0 %v1084_v53  ;;  %v430_v53 = vld [vmem:[%s3301_s5 + $0xf8] sm:$0xff] }
 0x14d   : > { %v519_v44 = vadd.f32 %v487_v59, %v455_v32  ;;  %v979_v32 = vmul.f32 %v831_v13, %v4750_v28  ;;  %v1733_v59 = vmul.f32 %v517_v1, %v517_v1  ;;  %v4014_v1 = vmul.f32 %v1578_v31, %v520_v10 }
 0x14e   : > { %v1102_v13 = vsel %vm1008_vm1, %v1007_v25, 0.0 }
 0x14f   : > { %1055 = vadd.xlane.f32.xlu1 %v1054_v41  ;;  %v490_v41 = vsub.f32 %v3947_v62, %v458_v16  ;;  %v462_v62 = vmul.f32 8193.0, %v430_v53  ;;  %v4011_v51 = vmul.f32 %v1578_v31, %v519_v44  ;;  %v1018_v26 = vsel %vm1008_vm1, %v979_v32, 0.0 }
 0x150   : > { %1088 = vadd.xlane.f32.xlu0 %v1087_v22  ;;  %v1006_v22 = vmul.f32 %v939_v12, %v4747_v21  ;;  %v4749_v12 = vld [vmem:[#allocation10_spill] sm:$0xff]  ;;  %v521_v21 = vadd.f32 %v489_v8, %v457_v24  ;;  %v525_v8 = vadd.f32 %v493_v56, %v461_v40  ;;  %v4002_v24 = vpop.xlane.xlu0 %1216  ;;  %v1735_v56 = vmul.f32 %v519_v44, %v519_v44 }
 0x151   : > { %v522_v27 = vadd.f32 %v490_v41, %v458_v16  ;;  %v494_v38 = vsub.f32 %v430_v53, %v462_v62  ;;  %v1582_v16 = vrot.slane %v3766_v54, %v3701_v60  ;;  %v4016_v41 = vpop.xlane.xlu1 %1222  ;;  %v1734_v44 = vmul.f32 %v518_v47, %v518_v47 }
 0x152   : > { %v1099_v17 = vsel %vm1008_vm1, %v1006_v22, 0.0  ;;  %v4018_v40 = vmul.f32 %v1578_v31, %v521_v21  ;;  %v1815_v11 = vsel %vm1008_vm1, %v1735_v56, 0.0  ;;  %v1740_v32 = vmul.f32 %v524_v43, %v524_v43 }
 0x153   : > { %1067 = vadd.xlane.f32.xlu1 %v1066_v48  ;;  %v1003_v48 = vmul.f32 %v927_v29, %v4749_v12  ;;  %v526_v20 = vadd.f32 %v494_v38, %v462_v62  ;;  %v4020_v58 = vmul.f32 %v1582_v16, %v523_v19  ;;  %v4022_v54 = vmul.f32 %v1582_v16, %v524_v43 }
 0x154   : > { %1097 = vadd.xlane.f32.xlu0 %v1096_v7  ;;  %v1809_v29 = vsel %vm1008_vm1, %v1733_v59, 0.0  ;;  %v4025_v7 = vmul.f32 %v1578_v31, %v522_v27  ;;  %v4027_v22 = vmul.f32 %v1582_v16, %v525_v8  ;;  %v4030_v62 = vpop.xlane.xlu0 %1225  ;;  %v1818_v12 = vsel %vm1008_vm1, %v1736_v42, 0.0  ;;  %v4753_v42 = vld [vmem:[#allocation14_spill] sm:$0xff] }
 0x155   : > { %v1090_v53 = vsel %vm1008_vm1, %v1003_v48, 0.0  ;;  %v1737_v48 = vmul.f32 %v521_v21, %v521_v21  ;;  %v4036_v50 = vpop.xlane.xlu1 %1219  ;;  %v1812_v10 = vsel %vm1008_vm1, %v1734_v44, 0.0  ;;  %v1738_v31 = vmul.f32 %v522_v27, %v522_v27  ;;  %v4752_v27 = vld [vmem:[#allocation13_spill] sm:$0xff] }
 0x156   : > { %v1830_v21 = vsel %vm1008_vm1, %v1740_v32, 0.0  ;;  %v1742_v5 = vmul.f32 %v526_v20, %v526_v20 }
 0x157   : > { %1079 = vadd.xlane.f32.xlu1 %v1078_v61  ;;  %v4033_v61 = vmul.f32 %v1582_v16, %v526_v20  ;;  %v1821_v28 = vsel %vm1008_vm1, %v1737_v48, 0.0  ;;  %v1741_v16 = vmul.f32 %v525_v8, %v525_v8  ;;  %v1824_v43 = vsel %vm1008_vm1, %v1738_v31, 0.0 }
 0x158   : > { %1100 = vadd.xlane.f32.xlu0 %v1099_v17  ;;  %v1739_v17 = vmul.f32 %v523_v19, %v523_v19  ;;  %v4040_v38 = vpop.xlane.xlu0 %1228  ;;  %v1558_v8 = vrot.slane %v3704_v4, %v3701_v60 }
 0x159   : > { %v4043_v59 = vpop.xlane.xlu1 %1231  ;;  %v1833_v25 = vsel %vm1008_vm1, %v1741_v16, 0.0  ;;  %v4757_v16 = vld [vmem:[#allocation18_spill] sm:$0xff] }
 0x15a   : > { %v1827_v47 = vsel %vm1008_vm1, %v1739_v17, 0.0 }
 0x15b   : > { %1091 = vadd.xlane.f32.xlu1 %v1090_v53  ;;  %v1554_v53 = vrot.slane %v3681_v33, %v3701_v60 }
 0x15c   : > { %1019 = vadd.xlane.f32.xlu0 %v1018_v26  ;;  %v4048_v19 = vpop.xlane.xlu0 %1744 }
 0x15d   : > { %v4052_v26 = vpop.xlane.xlu1 %1747  ;;  %v1583_v56 = vmul.f32 %v1554_v53, %v4752_v27  ;;  %v4758_v27 = vld [vmem:[#allocation19_spill] sm:$0xff] }
 0x15f   : > { %1103 = vadd.xlane.f32.xlu1 %v1102_v13  ;;  %v1584_v13 = vmul.f32 %v1554_v53, %v4753_v42  ;;  %v1615_v20 = vsel %vm1008_vm1, %v1583_v56, 0.0 }
 0x160   : > { %1810 = vadd.xlane.f32.xlu0 %v1809_v29  ;;  %v1836_v29 = vsel %vm1008_vm1, %v1742_v5, 0.0  ;;  %v4058_v33 = vpop.xlane.xlu0 %1756 }
 0x161   : > { %v1618_v48 = vsel %vm1008_vm1, %v1584_v13, 0.0 }
 0x163   : > { %1816 = vadd.xlane.f32.xlu1 %v1815_v11  ;;  %v4754_v11 = vld [vmem:[#allocation15_spill] sm:$0xff] }
 0x164   : > { %1819 = vadd.xlane.f32.xlu0 %v1818_v12  ;;  %v1587_v44 = vmul.f32 %v1558_v8, %v4754_v11  ;;  %v4063_v12 = vpop.xlane.xlu1 %1759  ;;  %v4071_v31 = vpop.xlane.xlu0 %1750  ;;  %v4760_v11 = vld [vmem:[#allocation21_spill] sm:$0xff] }
 0x166   : > { %v1627_v4 = vsel %vm1008_vm1, %v1587_v44, 0.0  ;;  %v1586_v44 = vmul.f32 %v1554_v53, %v4760_v11 }
 0x167   : > { %1813 = vadd.xlane.f32.xlu1 %v1812_v10  ;;  %v4755_v10 = vld [vmem:[#allocation16_spill] sm:$0xff] }
 0x168   : > { %1822 = vadd.xlane.f32.xlu0 %v1821_v28  ;;  %v1588_v17 = vmul.f32 %v1558_v8, %v4755_v10  ;;  %v4756_v28 = vld [vmem:[#allocation17_spill] sm:$0xff]  ;;  %v4075_v5 = vpop.xlane.xlu1 %1762 }
 0x169   : > { %v1585_v32 = vmul.f32 %v1554_v53, %v4756_v28  ;;  %v1566_v28 = vrot.slane %v3696_v3, %v3701_v60 }
 0x16b   : > { %1828 = vadd.xlane.f32.xlu1 %v1827_v47  ;;  %v1562_v47 = vrot.slane %v3678_v6, %v3701_v60  ;;  %v4759_v6 = vld [vmem:[#allocation20_spill] sm:$0xff] }
 0x16c   : > { %1831 = vadd.xlane.f32.xlu0 %v1830_v21  ;;  %v1630_v21 = vsel %vm1008_vm1, %v1588_v17, 0.0  ;;  %v4761_v17 = vld [vmem:[#allocation22_spill] sm:$0xff] }
 0x16d   : > { %v1591_v56 = vmul.f32 %v1562_v47, %v4758_v27  ;;  %v1592_v13 = vmul.f32 %v1562_v47, %v4759_v6 }
 0x16f   : > { %1825 = vadd.xlane.f32.xlu1 %v1824_v43  ;;  %v1589_v43 = vmul.f32 %v1558_v8, %v4757_v16  ;;  %v1642_v10 = vsel %vm1008_vm1, %v1592_v13, 0.0  ;;  %v1594_v13 = vmul.f32 %v1562_v47, %v3613_v45 }
 0x170   : > { %1834 = vadd.xlane.f32.xlu0 %v1833_v25  ;;  %v1621_v25 = vsel %vm1008_vm1, %v1585_v32, 0.0  ;;  %v1624_v32 = vsel %vm1008_vm1, %v1586_v44, 0.0  ;;  %v1597_v44 = vmul.f32 %v1566_v28, %v3623_v52 }
 0x171   : > { %v1633_v42 = vsel %vm1008_vm1, %v1589_v43, 0.0 }
 0x173   : > { %1837 = vadd.xlane.f32.xlu1 %v1836_v29  ;;  %v4079_v29 = vpop.xlane.xlu0 %1768 }
 0x174   : > { %1616 = vadd.xlane.f32.xlu0 %v1615_v20  ;;  %v1639_v20 = vsel %vm1008_vm1, %v1591_v56, 0.0 }
 0x177   : > { %1619 = vadd.xlane.f32.xlu1 %v1618_v48  ;;  %v4085_v48 = vpop.xlane.xlu1 %1771  ;;  %v4093_v43 = vpop.xlane.xlu0 %1753 }
 0x178   : > { %1628 = vadd.xlane.f32.xlu0 %v1627_v4  ;;  %v1590_v4 = vmul.f32 %v1558_v8, %v4761_v17 }
 0x17a   : > { %v1636_v53 = vsel %vm1008_vm1, %v1590_v4, 0.0  ;;  %v1657_v4 = vsel %vm1008_vm1, %v1597_v44, 0.0 }
 0x17b   : > { %1631 = vadd.xlane.f32.xlu1 %v1630_v21  ;;  %v4762_v21 = vld [vmem:[#allocation23_spill] sm:$0xff]  ;;  %v4097_v56 = vpop.xlane.xlu1 %1765  ;;  %v4101_v3 = vpop.xlane.xlu0 %1774 }
 0x17c   : > { %1622 = vadd.xlane.f32.xlu0 %v1621_v25  ;;  %v1593_v16 = vmul.f32 %v1562_v47, %v4762_v21  ;;  %v4763_v25 = vld [vmem:[#allocation24_spill] sm:$0xff]  ;;  %v4765_v21 = vld [vmem:[#allocation26_spill] sm:$0xff] }
 0x17d   : > { %v1595_v27 = vmul.f32 %v1566_v28, %v4763_v25  ;;  %v4766_v25 = vld [vmem:[#allocation27_spill] sm:$0xff] }
 0x17e   : > { %v1645_v8 = vsel %vm1008_vm1, %v1593_v16, 0.0  ;;  %v1598_v16 = vmul.f32 %v1566_v28, %v4765_v21 }
 0x17f   : > { %1634 = vadd.xlane.f32.xlu1 %v1633_v42  ;;  %v1596_v42 = vmul.f32 %v1566_v28, %v3609_v0  ;;  %v1651_v6 = vsel %vm1008_vm1, %v1595_v27, 0.0  ;;  %v1648_v0 = vsel %vm1008_vm1, %v1594_v13, 0.0  ;;  %v4115_v47 = vpop.xlane.xlu0 %1783 }
 0x180   : > { %1640 = vadd.xlane.f32.xlu0 %v1639_v20  ;;  %v1570_v20 = vrot.slane %v3723_v18, %v3701_v60 }
 0x181   : > { %v1654_v11 = vsel %vm1008_vm1, %v1596_v42, 0.0  ;;  %v4767_v42 = vld [vmem:[#allocation28_spill] sm:$0xff] }
 0x182   : > { %v1599_v17 = vmul.f32 %v1570_v20, %v3627_v35  ;;  %v1601_v27 = vmul.f32 %v1570_v20, %v4766_v25 }
 0x183   : > { %1643 = vadd.xlane.f32.xlu1 %v1642_v10  ;;  %v4109_v10 = vpop.xlane.xlu1 %1780  ;;  %v4123_v35 = vpop.xlane.xlu0 %1786 }
 0x184   : > { %1625 = vadd.xlane.f32.xlu0 %v1624_v32  ;;  %v4764_v32 = vld [vmem:[#allocation25_spill] sm:$0xff]  ;;  %v1663_v18 = vsel %vm1008_vm1, %v1599_v17, 0.0  ;;  %v1669_v13 = vsel %vm1008_vm1, %v1601_v27, 0.0  ;;  %v4770_v17 = vld [vmem:[#allocation30_spill] sm:$0xff]  ;;  %v1684_v27 = vsel %vm1008_vm1, %v4005_v49, 0.0  ;;  %v1696_v49 = vsel %vm1008_vm1, %v4025_v7, 0.0 }
 0x185   : > { %v1600_v45 = vmul.f32 %v1570_v20, %v4764_v32 }
 0x187   : > { %1637 = vadd.xlane.f32.xlu1 %v1636_v53  ;;  %v4119_v52 = vpop.xlane.xlu1 %1777  ;;  %v1666_v53 = vsel %vm1008_vm1, %v1600_v45, 0.0  ;;  %v4136_v45 = vpop.xlane.xlu0 %1795 }
 0x188   : > { %1646 = vadd.xlane.f32.xlu0 %v1645_v8  ;;  %v1660_v8 = vsel %vm1008_vm1, %v1598_v16, 0.0  ;;  %4771 = vst [vmem:[#allocation9_spill] sm:$0xff] %v4136_v45 }
 0x18b   : > { %1652 = vadd.xlane.f32.xlu1 %v1651_v6  ;;  %v1603_v6 = vmul.f32 %v3988_v30, %v4767_v42  ;;  %v4131_v44 = vpop.xlane.xlu1 %1792  ;;  %v4143_v16 = vpop.xlane.xlu0 %1798 }
 0x18c   : > { %1655 = vadd.xlane.f32.xlu0 %v1654_v11  ;;  %v4768_v11 = vld [vmem:[#allocation29_spill] sm:$0xff]  ;;  %4769 = vst [vmem:[#allocation10_spill] sm:$0xff] %v4131_v44  ;;  %4773 = vst [vmem:[#allocation13_spill] sm:$0xff] %v4143_v16  ;;  %v4792_v44 = vld [vmem:[#allocation11_spill] sm:$0xff] }
 0x18d   : > { %v1604_v28 = vmul.f32 %v3988_v30, %v4768_v11  ;;  %v1681_v30 = vsel %vm1008_vm1, %v3998_v9, 0.0  ;;  %v1693_v9 = vsel %vm1008_vm1, %v4018_v40, 0.0  ;;  %v1705_v40 = vsel %vm1008_vm1, %v4027_v22, 0.0  ;;  %v4777_v22 = vld [vmem:[#allocation32_spill] sm:$0xff] }
 0x18e   : > { %v1708_v11 = vsel %vm1008_vm1, %v4033_v61, 0.0  ;;  %v4779_v61 = vld [vmem:[#allocation38_spill] sm:$0xff] }
 0x18f   : > { %1649 = vadd.xlane.f32.xlu1 %v1648_v0  ;;  %v1675_v0 = vsel %vm1008_vm1, %v1603_v6, 0.0  ;;  %v1678_v32 = vsel %vm1008_vm1, %v1604_v28, 0.0  ;;  %v4139_v21 = vpop.xlane.xlu1 %1789 }
 0x190   : > { %1658 = vadd.xlane.f32.xlu0 %v1657_v4  ;;  %v1602_v4 = vmul.f32 %v1570_v20, %v4770_v17  ;;  %4772 = vst [vmem:[#allocation12_spill] sm:$0xff] %v4139_v21  ;;  %v1687_v20 = vsel %vm1008_vm1, %v4011_v51, 0.0  ;;  %v1699_v51 = vsel %vm1008_vm1, %v4020_v58, 0.0 }
 0x193   : > { %1664 = vadd.xlane.f32.xlu1 %v1663_v18  ;;  %v1672_v18 = vsel %vm1008_vm1, %v1602_v4, 0.0  ;;  %v4149_v25 = vpop.xlane.xlu1 %1804 }
 0x194   : > { %1667 = vadd.xlane.f32.xlu0 %v1666_v53  ;;  %v1690_v53 = vsel %vm1008_vm1, %v4014_v1, 0.0  ;;  %4774 = vst [vmem:[#allocation14_spill] sm:$0xff] %v4149_v25  ;;  %v1702_v1 = vsel %vm1008_vm1, %v4022_v54, 0.0 }
 0x197   : > { %1661 = vadd.xlane.f32.xlu1 %v1660_v8  ;;  %v4155_v8 = vpop.xlane.xlu0 %1807  ;;  %v4159_v42 = vpop.xlane.xlu1 %1801 }
 0x198   : > { %1670 = vadd.xlane.f32.xlu0 %v1669_v13  ;;  %4775 = vst [vmem:[#allocation15_spill] sm:$0xff] %v4155_v8  ;;  %4776 = vst [vmem:[#allocation16_spill] sm:$0xff] %v4159_v42  ;;  %v4784_v42 = vld [vmem:[#allocation40_spill] sm:$0xff] }
 0x199   : > { %v1242_v25 = vmax.f32 %v4784_v42, 1e-24 }
 0x19b   : > { %1676 = vadd.xlane.f32.xlu1 %v1675_v0 }
 0x19c   : > { %1679 = vadd.xlane.f32.xlu0 %v1678_v32  ;;  %v1233_v32 = vmax.f32 %v4777_v22, 1e-24  ;;  %v4783_v22 = vld [vmem:[#allocation39_spill] sm:$0xff] }
 0x19d   : > { %v1241_v8 = vmax.f32 %v4783_v22, 1e-24 }
 0x19e   : > { %2792 = vrsqrt.f32 %v1233_v32  ;;  %v1246_v32 = vmax.f32 %v3844_v2, 1e-24 }
 0x19f   : > { %1673 = vadd.xlane.f32.xlu1 %v1672_v18  ;;  %v4778_v18 = vld [vmem:[#allocation36_spill] sm:$0xff] }
 0x1a0   : > { %1682 = vadd.xlane.f32.xlu0 %v1681_v30  ;;  %v1238_v30 = vmax.f32 %v4778_v18, 1e-24 }
 0x1a2   : > { %2794 = vrsqrt.f32 %v1238_v30  ;;  %v1247_v30 = vmax.f32 %v3864_v23, 1e-24 }
 0x1a3   : > { %1688 = vadd.xlane.f32.xlu1 %v1687_v20 }
 0x1a4   : > { %1691 = vadd.xlane.f32.xlu0 %v1690_v53  ;;  %v1239_v53 = vmax.f32 %v4779_v61, 1e-24  ;;  %v1240_v61 = vmax.f32 %v3805_v34, 1e-24  ;;  %v1243_v34 = vmax.f32 %v3823_v57, 1e-24 }
 0x1a6   : > { %2796 = vrsqrt.f32 %v1239_v53  ;;  %v1245_v53 = vmax.f32 %v3833_v15, 1e-24  ;;  %v1248_v15 = vmax.f32 %v3894_v63, 1e-24  ;;  %v1255_v63 = vmax.f32 %v3958_v36, 1e-24 }
 0x1a7   : > { %1685 = vadd.xlane.f32.xlu1 %v1684_v27 }
 0x1a8   : > { %1694 = vadd.xlane.f32.xlu0 %v1693_v9  ;;  %v4780_v9 = vld [vmem:[#allocation35_spill] sm:$0xff]  ;;  %v4209_v42 = vpop.eup %2792 }
 0x1ab   : > { %1700 = vadd.xlane.f32.xlu1 %v1699_v51  ;;  %v1237_v51 = vmax.f32 %v4780_v9, 1e-24 }
 0x1ac   : > { %1703 = vadd.xlane.f32.xlu0 %v1702_v1  ;;  %v4781_v1 = vld [vmem:[#allocation33_spill] sm:$0xff]  ;;  %v2795_v22 = vpop.eup %2794 }
 0x1ad   : > { %v4163_v6 = vpop.xlane.xlu0 %1010  ;;  %2798 = vrsqrt.f32 %v1237_v51 }
 0x1af   : > { %1697 = vadd.xlane.f32.xlu1 %v1696_v49  ;;  %v1234_v49 = vmax.f32 %v4781_v1, 1e-24 }
 0x1b0   : > { %1706 = vadd.xlane.f32.xlu0 %v1705_v40  ;;  %v4169_v13 = vpop.xlane.xlu1 %1046  ;;  %v4782_v40 = vld [vmem:[#allocation37_spill] sm:$0xff] }
 0x1b1   : > { %v1023_v58 = vpop.xlane.xlu0 %1022  ;;  %2800 = vrsqrt.f32 %v1234_v49 }
 0x1b3   : > { %1709 = vadd.xlane.f32.xlu1 %v1708_v11  ;;  %v1235_v11 = vmax.f32 %v4782_v40, 1e-24  ;;  %v4785_v40 = vld [vmem:[#allocation41_spill] sm:$0xff] }
 0x1b4   : > { %v4173_v28 = vpop.xlane.xlu1 %1058  ;;  %v1236_v51 = vmax.f32 %v4785_v40, 1e-24  ;;  %v1254_v40 = vmax.f32 %v3932_v14, 1e-24 }
 0x1b5   : > { %v4175_v54 = vpop.xlane.xlu0 %1034  ;;  %2802 = vrsqrt.f32 %v1235_v11  ;;  %v4786_v11 = vlaneseq }
 0x1b6   : > { %2804 = vrsqrt.f32 %v1241_v8  ;;  %v1249_v8 = vmax.f32 %v3875_v37, 1e-24  ;;  %v4787_v37 = vld [vmem:[#allocation31_spill] sm:$0xff] }
 0x1b7   : > { %2806 = vrsqrt.f32 %v1240_v61  ;;  %v1362_v2 = vand.u32 127, %v4786_v11  ;;  %v1253_v61 = vmax.f32 %v3916_v55, 1e-24 }
 0x1b8   : > { %v4177_v0 = vpop.xlane.xlu1 %1070  ;;  %2808 = vrsqrt.f32 %v1242_v25  ;;  %v2797_v25 = vpop.eup %2796 }
 0x1b9   : > { %v4179_v17 = vpop.xlane.xlu0 %1016  ;;  %2810 = vrsqrt.f32 %v1246_v32  ;;  %v2799_v32 = vpop.eup %2798  ;;  %v4223_v45 = vsub.s32 %v1362_v2, %v4787_v37 }
 0x1ba   : > { %2812 = vrsqrt.f32 %v1247_v30 }
 0x1bb   : > { %2814 = vrsqrt.f32 %v1245_v53  ;;  %v4220_v30 = vpop.eup %2800  ;;  %v1301_v53 = vmul.f32 %v2799_v32, %v1023_v58 }
 0x1bc   : > { %v4181_v7 = vpop.xlane.xlu1 %1082  ;;  %2816 = vrsqrt.f32 %v1236_v51 }
 0x1bd   : > { %v4183_v4 = vpop.xlane.xlu0 %1040  ;;  %2818 = vrsqrt.f32 %v1243_v34 }
 0x1be   : > { %2820 = vrsqrt.f32 %v1249_v8 }
 0x1bf   : > { %v4228_v55 = vpop.eup %2802  ;;  %2822 = vrsqrt.f32 %v1248_v15  ;;  %v1382_v15 = vrot.slane %v1301_v53, %v4223_v45 }
 0x1c0   : > { %v4187_v20 = vpop.xlane.xlu1 %1094  ;;  %2824 = vrsqrt.f32 %v1253_v61 }
 0x1c1   : > { %v4190_v27 = vpop.xlane.xlu0 %1049  ;;  %2826 = vrsqrt.f32 %v1254_v40 }
 0x1c2   : > { %2828 = vrsqrt.f32 %v1255_v63  ;;  %v1262_v63 = vmax.f32 %v4030_v62, 1e-24  ;;  %v1261_v62 = vmax.f32 %v4016_v41, 1e-24  ;;  %v1264_v41 = vmax.f32 %v4043_v59, 1e-24 }
 0x1c3   : > { %v1259_v59 = vmax.f32 %v4002_v24, 1e-24 }
 0x1c4   : > { %v4195_v60 = vpop.xlane.xlu1 %1013 }
 0x1c5   : > { %v4198_v18 = vpop.xlane.xlu0 %1052  ;;  %v1298_v24 = vmul.f32 %v4220_v30, %v4195_v60  ;;  %v1299_v30 = vmul.f32 %v4228_v55, %v4179_v17 }
 0x1c8   : > { %v1026_v9 = vpop.xlane.xlu1 %1025 }
 0x1c9   : > { %v4204_v1 = vpop.xlane.xlu0 %1061  ;;  %v1302_v57 = vmul.f32 %v2795_v22, %v1026_v9  ;;  %v4230_v9 = vpop.eup %2804  ;;  %v4788_v22 = vld [vmem:[#allocation42_spill] sm:$0xff] }
 0x1ca   : > { %v2807_v34 = vpop.eup %2806  ;;  %v1250_v2 = vmax.f32 %v4788_v22, 1e-24 }
 0x1cb   : > { %v1386_v14 = vrot.slane %v1302_v57, %v4223_v45  ;;  %v4236_v58 = vpop.eup %2808  ;;  %v1256_v57 = vmax.f32 %v3993_v46, 1e-24 }
 0x1cc   : > { %v1029_v49 = vpop.xlane.xlu1 %1028  ;;  %v2811_v21 = vpop.eup %2810 }
 0x1cd   : > { %v4213_v23 = vpop.xlane.xlu0 %1064  ;;  %v1303_v16 = vmul.f32 %v2797_v25, %v1029_v49  ;;  %v1244_v49 = vmax.f32 %v3854_v39, 1e-24  ;;  %v4789_v25 = vld [vmem:[#allocation43_spill] sm:$0xff]  ;;  %v2813_v39 = vpop.eup %2812  ;;  %v1310_v40 = vmul.f32 %v2811_v21, %v4190_v27  ;;  %v1497_v22 = vsel %vm1491_vm2, %v1386_v14, %v1382_v15 }
 0x1ce   : > { %v1251_v32 = vmax.f32 %v4789_v25, 1e-24  ;;  %v2815_v25 = vpop.eup %2814  ;;  %v1311_v53 = vmul.f32 %v2813_v39, %v4198_v18  ;;  %v1263_v21 = vmax.f32 %v4040_v38, 1e-24 }
 0x1cf   : > { %v1390_v8 = vrot.slane %v1303_v16, %v4223_v45  ;;  %2830 = vrsqrt.f32 %v1244_v49  ;;  %v1309_v27 = vmul.f32 %v2815_v25, %v4169_v13 }
 0x1d0   : > { %v4218_v11 = vpop.xlane.xlu1 %1037  ;;  %2832 = vrsqrt.f32 %v1250_v2  ;;  %v1418_v2 = vrot.slane %v1310_v40, %v4223_v45  ;;  %v1422_v25 = vrot.slane %v1311_v53, %v4223_v45  ;;  %v1258_v40 = vmax.f32 %v4792_v44, 1e-24 }
 0x1d1   : > { %v4226_v51 = vpop.xlane.xlu0 %1073  ;;  %v1498_v46 = vsel %vm1493_vm3, %v1390_v8, %v1497_v22  ;;  %2834 = vrsqrt.f32 %v1256_v57  ;;  %v4790_v8 = vld [vmem:[#allocation44_spill] sm:$0xff]  ;;  %v4791_v22 = vld [vmem:[#allocation45_spill] sm:$0xff]  ;;  %v1414_v57 = vrot.slane %v1309_v27, %v4223_v45 }
 0x1d2   : > { %2836 = vrsqrt.f32 %v1251_v32  ;;  %v1252_v39 = vmax.f32 %v4790_v8, 1e-24  ;;  %v1257_v13 = vmax.f32 %v4791_v22, 1e-24 }
 0x1d3   : > { %2838 = vrsqrt.f32 %v1262_v63  ;;  %v1503_v63 = vsel %vm1491_vm2, %v1418_v2, %v1414_v57 }
 0x1d4   : > { %v1032_v36 = vpop.xlane.xlu1 %1031  ;;  %2840 = vrsqrt.f32 %v1263_v21 }
 0x1d5   : > { %v1304_v37 = vmul.f32 %v2807_v34, %v1032_v36  ;;  %v1077_v61 = vpop.xlane.xlu0 %1076  ;;  %v4249_v36 = vpop.eup %2816  ;;  %2842 = vrsqrt.f32 %v1261_v62 }
 0x1d6   : > { %v2819_v49 = vpop.eup %2818  ;;  %2844 = vrsqrt.f32 %v1252_v39 }
 0x1d7   : > { %v1394_v16 = vrot.slane %v1304_v37, %v4223_v45  ;;  %v2821_v15 = vpop.eup %2820  ;;  %2846 = vrsqrt.f32 %v1257_v13 }
 0x1d8   : > { %v4246_v34 = vpop.xlane.xlu1 %1043  ;;  %v2823_v38 = vpop.eup %2822  ;;  %2848 = vrsqrt.f32 %v1264_v41  ;;  %v4278_v13 = vmul.f32 %v2821_v15, %v4173_v28 }
 0x1d9   : > { %v4253_v37 = vpop.xlane.xlu0 %1085  ;;  %v1499_v14 = vsel %vm1495_vm4, %v1394_v16, %v1498_v46  ;;  %v2825_v46 = vpop.eup %2824  ;;  %2850 = vrsqrt.f32 %v1258_v40 }
 0x1da   : > { %v1530_v18 = vsel %vm1526_vm5, %v1499_v14, -inf  ;;  %v2827_v8 = vpop.eup %2826  ;;  %v1317_v44 = vmul.f32 %v2825_v46, %v4177_v0  ;;  %2852 = vrsqrt.f32 %v1259_v59 }
 0x1db   : > { %1531 = vmax.xlane.f32.xlu1 %v1530_v18  ;;  %v2829_v18 = vpop.eup %2828  ;;  %v1318_v53 = vmul.f32 %v2827_v8, %v4226_v51  ;;  %v1297_v51 = vmul.f32 %v4209_v42, %v4163_v6  ;;  %v1305_v6 = vmul.f32 %v4230_v9, %v4175_v54  ;;  %v1307_v54 = vmul.f32 %v2819_v49, %v4183_v4 }
 0x1dc   : > { %v1056_v16 = vpop.xlane.xlu1 %1055  ;;  %v1319_v21 = vmul.f32 %v2829_v18, %v1077_v61  ;;  %v2831_v2 = vpop.eup %2830  ;;  %v1446_v60 = vrot.slane %v1317_v44, %v4223_v45  ;;  %v1370_v9 = vrot.slane %v1298_v24, %v4223_v45  ;;  %v1374_v49 = vrot.slane %v1299_v30, %v4223_v45 }
 0x1dd   : > { %v1312_v14 = vmul.f32 %v2823_v38, %v1056_v16  ;;  %v4264_v32 = vpop.xlane.xlu0 %1088  ;;  %v1504_v38 = vsel %vm1493_vm3, %v1422_v25, %v1503_v63  ;;  %v1260_v16 = vmax.f32 %v4036_v50, 1e-24  ;;  %v2833_v25 = vpop.eup %2832  ;;  %v1306_v50 = vmul.f32 %v4236_v58, %v4218_v11 }
 0x1de   : > { %v1450_v0 = vrot.slane %v1318_v53, %v4223_v45  ;;  %v2835_v46 = vpop.eup %2834  ;;  %v1454_v28 = vrot.slane %v1319_v21, %v4223_v45  ;;  %v1366_v57 = vrot.slane %v1297_v51, %v4223_v45  ;;  %v1398_v53 = vrot.slane %v1305_v6, %v4223_v45 }
 0x1df   : > { %v1426_v22 = vrot.slane %v1312_v14, %v4223_v45  ;;  %v2837_v15 = vpop.eup %2836  ;;  %2854 = vrsqrt.f32 %v1260_v16  ;;  %v1430_v14 = vrot.slane %v4278_v13, %v4223_v45  ;;  %v1402_v40 = vrot.slane %v1306_v50, %v4223_v45 }
 0x1e0   : > { %v1068_v27 = vpop.xlane.xlu1 %1067  ;;  %v2839_v58 = vpop.eup %2838  ;;  %v1509_v18 = vsel %vm1491_vm2, %v1450_v0, %v1446_v60  ;;  %v1314_v44 = vmul.f32 %v2833_v25, %v4204_v1  ;;  %v1315_v13 = vmul.f32 %v2837_v15, %v4213_v23  ;;  %v1406_v0 = vrot.slane %v1307_v54, %v4223_v45 }
 0x1e1   : > { %v1098_v62 = vpop.xlane.xlu0 %1097  ;;  %v1505_v39 = vsel %vm1495_vm4, %v1426_v22, %v1504_v38  ;;  %v2841_v8 = vpop.eup %2840  ;;  %v1308_v22 = vmul.f32 %v2831_v2, %v4246_v34  ;;  %v1510_v38 = vsel %vm1493_vm3, %v1454_v28, %v1509_v18  ;;  %v1492_v2 = vsel %vm1491_vm2, %v1370_v9, %v1366_v57 }
 0x1e2   : > { %v1536_v61 = vsel %vm1526_vm5, %v1505_v39, -inf  ;;  %v1326_v63 = vmul.f32 %v2839_v58, %v1098_v62  ;;  %v2843_v55 = vpop.eup %2842  ;;  %v1500_v1 = vsel %vm1491_vm2, %v1402_v40, %v1398_v53  ;;  %v1494_v30 = vsel %vm1493_vm3, %v1374_v49, %v1492_v2 }
 0x1e3   : > { %1537 = vmax.xlane.f32.xlu1 %v1536_v61  ;;  %v2845_v4 = vpop.eup %2844  ;;  %v1325_v16 = vmul.f32 %v2843_v55, %v4187_v20  ;;  %v1410_v25 = vrot.slane %v1308_v22, %v4223_v45  ;;  %v1501_v57 = vsel %vm1493_vm3, %v1406_v0, %v1500_v1  ;;  %v1840_v1 = vmax.f32 %v4052_v26, 1e-24 }
 0x1e4   : > { %v1080_v42 = vpop.xlane.xlu1 %1079  ;;  %v2847_v51 = vpop.eup %2846  ;;  %v1482_v20 = vrot.slane %v1326_v63, %v4223_v45  ;;  %v1842_v26 = vmax.f32 %v4093_v43, 1e-24 }
 0x1e5   : > { %v1320_v41 = vmul.f32 %v2835_v46, %v1080_v42  ;;  %v1101_v11 = vpop.xlane.xlu0 %1100  ;;  %v2849_v61 = vpop.eup %2848  ;;  %v1321_v50 = vmul.f32 %v2847_v51, %v4181_v7  ;;  %v1316_v46 = vmul.f32 %v2845_v4, %v1068_v27  ;;  %v1478_v42 = vrot.slane %v1325_v16, %v4223_v45 }
 0x1e6   : > { %v1327_v59 = vmul.f32 %v2841_v8, %v1101_v11  ;;  %v2851_v28 = vpop.eup %2850  ;;  %v1434_v7 = vrot.slane %v1314_v44, %v4223_v45  ;;  %v1438_v11 = vrot.slane %v1315_v13, %v4223_v45  ;;  %v1502_v53 = vsel %vm1495_vm4, %v1410_v25, %v1501_v57 }
 0x1e7   : > { %v1458_v17 = vrot.slane %v1320_v41, %v4223_v45  ;;  %v2853_v41 = vpop.eup %2852  ;;  %v1322_v27 = vmul.f32 %v2851_v28, %v4253_v37  ;;  %v1515_v8 = vsel %vm1491_vm2, %v1482_v20, %v1478_v42  ;;  %v1442_v63 = vrot.slane %v1316_v46, %v4223_v45 }
 0x1e8   : > { %v1092_v21 = vpop.xlane.xlu1 %1091  ;;  %v1486_v23 = vrot.slane %v1327_v59, %v4223_v45  ;;  %v1323_v9 = vmul.f32 %v2853_v41, %v4264_v32  ;;  %v1506_v59 = vsel %vm1491_vm2, %v1434_v7, %v1430_v14  ;;  %v1462_v44 = vrot.slane %v1321_v50, %v4223_v45 }
 0x1e9   : > { %v1020_v39 = vpop.xlane.xlu0 %1019  ;;  %v1511_v62 = vsel %vm1495_vm4, %v1458_v17, %v1510_v38  ;;  %v2855_v54 = vpop.eup %2854  ;;  %v1466_v38 = vrot.slane %v1322_v27, %v4223_v45  ;;  %v1507_v16 = vsel %vm1493_vm3, %v1438_v11, %v1506_v59  ;;  %v1841_v46 = vmax.f32 %v4071_v31, 1e-24 }
 0x1ea   : > { %v1300_v24 = vmul.f32 %v4249_v36, %v1020_v39  ;;  %v1542_v34 = vsel %vm1526_vm5, %v1511_v62, -inf  ;;  %v1324_v17 = vmul.f32 %v2855_v54, %v1092_v21  ;;  %v1516_v37 = vsel %vm1493_vm3, %v1486_v23, %v1515_v8 }
 0x1eb   : > { %1543 = vmax.xlane.f32.xlu1 %v1542_v34  ;;  %v1470_v49 = vrot.slane %v1323_v9, %v4223_v45  ;;  %v1533_v21 = vsel %vm1526_vm5, %v1502_v53, -inf  ;;  %v1508_v14 = vsel %vm1495_vm4, %v1442_v63, %v1507_v16  ;;  %v1512_v13 = vsel %vm1491_vm2, %v1466_v38, %v1462_v44 }
 0x1ec   : > { %v1378_v36 = vrot.slane %v1300_v24, %v4223_v45  ;;  %v1104_v6 = vpop.xlane.xlu1 %1103  ;;  %v1474_v39 = vrot.slane %v1324_v17, %v4223_v45  ;;  %v1539_v24 = vsel %vm1526_vm5, %v1508_v14, -inf  ;;  %v1839_v23 = vmax.f32 %v4048_v19, 1e-24 }
 0x1ed   : > { %v1328_v15 = vmul.f32 %v2849_v61, %v1104_v6  ;;  %v4320_v60 = vpop.xlane.xlu0 %1810  ;;  %v1513_v34 = vsel %vm1493_vm3, %v1470_v49, %v1512_v13  ;;  %2856 = vrsqrt.f32 %v1840_v1  ;;  %v1845_v28 = vmax.f32 %v4075_v5, 1e-24 }
 0x1ee   : > { %v1496_v58 = vsel %vm1495_vm4, %v1378_v36, %v1494_v30  ;;  %v1514_v61 = vsel %vm1495_vm4, %v1474_v39, %v1513_v34  ;;  %v1844_v36 = vmax.f32 %v4063_v12, 1e-24  ;;  %v1843_v7 = vmax.f32 %v4058_v33, 1e-24 }
 0x1ef   : > { %v1490_v40 = vrot.slane %v1328_v15, %v4223_v45  ;;  %v1527_v18 = vsel %vm1526_vm5, %v1496_v58, -inf  ;;  %v1545_v0 = vsel %vm1526_vm5, %v1514_v61, -inf  ;;  %2858 = vrsqrt.f32 %v1841_v46  ;;  %v4794_v46 = vld [vmem:[#allocation12_spill] sm:$0xff] }
 0x1f0   : > { %1528 = vmax.xlane.f32.xlu0 %v1527_v18  ;;  %v4332_v55 = vpop.xlane.xlu1 %1816  ;;  %2860 = vrsqrt.f32 %v1839_v23  ;;  %v1846_v19 = vmax.f32 %v4097_v56, 1e-24  ;;  %v1848_v12 = vmax.f32 %v4085_v48, 1e-24  ;;  %v1849_v5 = vmax.f32 %v4101_v3, 1e-24 }
 0x1f1   : > { %v4336_v22 = vpop.xlane.xlu0 %1819  ;;  %v1517_v32 = vsel %vm1495_vm4, %v1490_v40, %v1516_v37  ;;  %2862 = vrsqrt.f32 %v1844_v36  ;;  %v1847_v33 = vmax.f32 %v4079_v29, 1e-24  ;;  %v1850_v48 = vmax.f32 %v4119_v52, 1e-24 }
 0x1f2   : > { %v1548_v4 = vsel %vm1526_vm5, %v1517_v32, -inf  ;;  %2864 = vrsqrt.f32 %v1845_v28  ;;  %v1851_v3 = vmax.f32 %v4109_v10, 1e-24  ;;  %v1852_v63 = vmax.f32 %v4115_v47, 1e-24 }
 0x1f3   : > { %1549 = vmax.xlane.f32.xlu1 %v1548_v4  ;;  %2866 = vrsqrt.f32 %v1843_v7  ;;  %v1853_v59 = vmax.f32 %v4123_v35, 1e-24  ;;  %v1854_v23 = vmax.f32 %v4794_v46, 1e-24 }
 0x1f4   : > { %1534 = vmax.xlane.f32.xlu0 %v1533_v21  ;;  %v4347_v62 = vpop.xlane.xlu1 %1813  ;;  %2868 = vrsqrt.f32 %v1842_v26 }
 0x1f5   : > { %v4350_v51 = vpop.xlane.xlu0 %1822  ;;  %2870 = vrsqrt.f32 %v1846_v19  ;;  %v4795_v19 = vld [vmem:[#allocation9_spill] sm:$0xff] }
 0x1f6   : > { %2872 = vrsqrt.f32 %v1848_v12  ;;  %v1856_v12 = vmax.f32 %v4795_v19, 1e-24  ;;  %v1864_v19 = vmax.f32 %v4336_v22, 1e-24 }
 0x1f7   : > { %v2857_v11 = vpop.eup %2856  ;;  %2874 = vrsqrt.f32 %v1849_v5 }
 0x1f8   : > { %1540 = vmax.xlane.f32.xlu0 %v1539_v24  ;;  %v4355_v2 = vpop.xlane.xlu1 %1828  ;;  %2876 = vrsqrt.f32 %v1847_v33  ;;  %v4796_v33 = vld [vmem:[#allocation13_spill] sm:$0xff] }
 0x1f9   : > { %v4358_v50 = vpop.xlane.xlu0 %1831  ;;  %v2859_v27 = vpop.eup %2858  ;;  %2878 = vrsqrt.f32 %v1850_v48 }
 0x1fa   : > { %v2861_v57 = vpop.eup %2860  ;;  %2880 = vrsqrt.f32 %v1851_v3 }
 0x1fb   : > { %v2863_v56 = vpop.eup %2862  ;;  %2882 = vrsqrt.f32 %v1852_v63  ;;  %v4797_v63 = vld [vmem:[#allocation14_spill] sm:$0xff] }
 0x1fc   : > { %1546 = vmax.xlane.f32.xlu0 %v1545_v0  ;;  %v4361_v20 = vpop.xlane.xlu1 %1825  ;;  %v2865_v40 = vpop.eup %2864  ;;  %2884 = vrsqrt.f32 %v1853_v59  ;;  %v4793_v0 = vld [vmem:[#allocation10_spill] sm:$0xff] }
 0x1fd   : > { %v4364_v25 = vpop.xlane.xlu0 %1834  ;;  %v2867_v29 = vpop.eup %2866  ;;  %v1855_v1 = vmax.f32 %v4793_v0, 1e-24  ;;  %2886 = vrsqrt.f32 %v1854_v23 }
 0x1fe   : > { %v2869_v32 = vpop.eup %2868 }
 0x1ff   : > { %v2871_v16 = vpop.eup %2870  ;;  %2888 = vrsqrt.f32 %v1855_v1 }
 0x200   : > { %v4369_v6 = vpop.xlane.xlu1 %1837  ;;  %v2873_v61 = vpop.eup %2872  ;;  %2890 = vrsqrt.f32 %v1856_v12 }
 0x201   : > { %v1617_v42 = vpop.xlane.xlu0 %1616  ;;  %v2875_v28 = vpop.eup %2874 }
 0x202   : > { %v1903_v8 = vmul.f32 %v2861_v57, %v1617_v42 }
 0x204   : > { %v1620_v15 = vpop.xlane.xlu1 %1619  ;;  %v1970_v52 = vrot.slane %v1903_v8, %v4223_v45 }
 0x205   : > { %v1629_v31 = vpop.xlane.xlu0 %1628  ;;  %v1904_v43 = vmul.f32 %v2857_v11, %v1620_v15  ;;  %v1857_v11 = vmax.f32 %v4796_v33, 1e-24 }
 0x206   : > { %v1907_v38 = vmul.f32 %v2867_v29, %v1629_v31  ;;  %v2877_v31 = vpop.eup %2876 }
 0x207   : > { %v1974_v17 = vrot.slane %v1904_v43, %v4223_v45  ;;  %2892 = vrsqrt.f32 %v1857_v11 }
 0x208   : > { %v1632_v30 = vpop.xlane.xlu1 %1631  ;;  %v1986_v14 = vrot.slane %v1907_v38, %v4223_v45 }
 0x209   : > { %v1623_v41 = vpop.xlane.xlu0 %1622  ;;  %v1908_v18 = vmul.f32 %v2863_v56, %v1632_v30  ;;  %v2095_v47 = vsel %vm1491_vm2, %v1974_v17, %v1970_v52  ;;  %v2879_v56 = vpop.eup %2878  ;;  %v1859_v17 = vmax.f32 %v4797_v63, 1e-24  ;;  %v4799_v52 = vld [vmem:[#allocation15_spill] sm:$0xff] }
 0x20a   : > { %v1905_v54 = vmul.f32 %v2859_v27, %v1623_v41 }
 0x20b   : > { %v1990_v10 = vrot.slane %v1908_v18, %v4223_v45 }
 0x20c   : > { %v1635_v58 = vpop.xlane.xlu1 %1634  ;;  %v1978_v4 = vrot.slane %v1905_v54, %v4223_v45 }
 0x20d   : > { %v1641_v9 = vpop.xlane.xlu0 %1640  ;;  %v1909_v37 = vmul.f32 %v2865_v40, %v1635_v58  ;;  %v2098_v42 = vsel %vm1491_vm2, %v1990_v10, %v1986_v14  ;;  %v2881_v40 = vpop.eup %2880 }
 0x20e   : > { %v2096_v34 = vsel %vm1493_vm3, %v1978_v4, %v2095_v47  ;;  %v1911_v27 = vmul.f32 %v2877_v31, %v1641_v9  ;;  %v2883_v29 = vpop.eup %2882 }
 0x20f   : > { %v1994_v44 = vrot.slane %v1909_v37, %v4223_v45  ;;  %v4798_v37 = vld [vmem:[#allocation16_spill] sm:$0xff] }
 0x210   : > { %v1644_v53 = vpop.xlane.xlu1 %1643  ;;  %v2002_v3 = vrot.slane %v1911_v27, %v4223_v45 }
 0x211   : > { %v1626_v49 = vpop.xlane.xlu0 %1625  ;;  %v1912_v7 = vmul.f32 %v2873_v61, %v1644_v53  ;;  %v2099_v41 = vsel %vm1493_vm3, %v1994_v44, %v2098_v42  ;;  %v1858_v53 = vmax.f32 %v4798_v37, 1e-24  ;;  %v1861_v44 = vmax.f32 %v4320_v60, 1e-24 }
 0x212   : > { %v1906_v21 = vmul.f32 %v2869_v32, %v1626_v49  ;;  %v2885_v32 = vpop.eup %2884 }
 0x213   : > { %v2006_v54 = vrot.slane %v1912_v7, %v4223_v45  ;;  %2894 = vrsqrt.f32 %v1858_v53 }
 0x214   : > { %v1982_v39 = vrot.slane %v1906_v21, %v4223_v45  ;;  %v1638_v35 = vpop.xlane.xlu1 %1637  ;;  %v1860_v21 = vmax.f32 %v4799_v52, 1e-24  ;;  %2896 = vrsqrt.f32 %v1859_v17 }
 0x215   : > { %v1910_v13 = vmul.f32 %v2871_v16, %v1638_v35  ;;  %v1647_v24 = vpop.xlane.xlu0 %1646  ;;  %v2101_v59 = vsel %vm1491_vm2, %v2006_v54, %v2002_v3 }
 0x216   : > { %v2097_v36 = vsel %vm1495_vm4, %v1982_v39, %v2096_v34  ;;  %v1913_v30 = vmul.f32 %v2875_v28, %v1647_v24  ;;  %v2887_v34 = vpop.eup %2886  ;;  %2898 = vrsqrt.f32 %v1860_v21  ;;  %v1862_v28 = vmax.f32 %v4347_v62, 1e-24 }
 0x217   : > { %v1998_v26 = vrot.slane %v1910_v13, %v4223_v45  ;;  %v2127_v15 = vsel %vm1526_vm5, %v2097_v36, -inf  ;;  %v2889_v1 = vpop.eup %2888  ;;  %2900 = vrsqrt.f32 %v1861_v44  ;;  %v1863_v36 = vmax.f32 %v4332_v55, 1e-24 }
 0x218   : > { %2128 = vmax.xlane.f32.xlu0 %v2127_v15  ;;  %v1653_v5 = vpop.xlane.xlu1 %1652  ;;  %v2010_v48 = vrot.slane %v1913_v30, %v4223_v45  ;;  %v2891_v23 = vpop.eup %2890  ;;  %2902 = vrsqrt.f32 %v1862_v28  ;;  %v1867_v62 = vmax.f32 %v4355_v2, 1e-24 }
 0x219   : > { %v1656_v43 = vpop.xlane.xlu0 %1655  ;;  %v2100_v58 = vsel %vm1495_vm4, %v1998_v26, %v2099_v41  ;;  %v1915_v38 = vmul.f32 %v2881_v40, %v1653_v5  ;;  %v2893_v42 = vpop.eup %2892  ;;  %v1865_v41 = vmax.f32 %v4350_v51, 1e-24  ;;  %2904 = vrsqrt.f32 %v1863_v36 }
 0x21a   : > { %v2130_v57 = vsel %vm1526_vm5, %v2100_v58, -inf  ;;  %v1916_v4 = vmul.f32 %v2883_v29, %v1656_v43  ;;  %v2102_v47 = vsel %vm1493_vm3, %v2010_v48, %v2101_v59  ;;  %2906 = vrsqrt.f32 %v1864_v19 }
 0x21b   : > { %2131 = vmax.xlane.f32.xlu1 %v2130_v57  ;;  %v2018_v13 = vrot.slane %v1915_v38, %v4223_v45  ;;  %v1868_v58 = vmax.f32 %v4358_v50, 1e-24  ;;  %2908 = vrsqrt.f32 %v1865_v41  ;;  %v1869_v40 = vmax.f32 %v4364_v25, 1e-24 }
 0x21c   : > { %v1650_v8 = vpop.xlane.xlu1 %1649  ;;  %v2022_v24 = vrot.slane %v1916_v4, %v4223_v45  ;;  %2910 = vrsqrt.f32 %v1867_v62 }
 0x21d   : > { %v1914_v9 = vmul.f32 %v2879_v56, %v1650_v8  ;;  %v1659_v18 = vpop.xlane.xlu0 %1658  ;;  %v2895_v22 = vpop.eup %2894  ;;  %v1866_v8 = vmax.f32 %v4361_v20, 1e-24  ;;  %2912 = vrsqrt.f32 %v1868_v58  ;;  %v1870_v20 = vmax.f32 %v4369_v6, 1e-24 }
 0x21e   : > { %v1917_v10 = vmul.f32 %v2885_v32, %v1659_v18  ;;  %v2104_v7 = vsel %vm1491_vm2, %v2022_v24, %v2018_v13  ;;  %v2897_v54 = vpop.eup %2896 }
 0x21f   : > { %v2014_v49 = vrot.slane %v1914_v9, %v4223_v45  ;;  %2914 = vrsqrt.f32 %v1866_v8 }
 0x220   : > { %v1665_v16 = vpop.xlane.xlu1 %1664  ;;  %v2026_v61 = vrot.slane %v1917_v10, %v4223_v45  ;;  %v2899_v2 = vpop.eup %2898  ;;  %2916 = vrsqrt.f32 %v1869_v40 }
 0x221   : > { %v1668_v39 = vpop.xlane.xlu0 %1667  ;;  %v2103_v35 = vsel %vm1495_vm4, %v2014_v49, %v2102_v47  ;;  %v1919_v26 = vmul.f32 %v2889_v1, %v1665_v16  ;;  %v2901_v3 = vpop.eup %2900  ;;  %2918 = vrsqrt.f32 %v1870_v20 }
 0x222   : > { %v2133_v14 = vsel %vm1526_vm5, %v2103_v35, -inf  ;;  %v1920_v15 = vmul.f32 %v2891_v23, %v1668_v39  ;;  %v2105_v5 = vsel %vm1493_vm3, %v2026_v61, %v2104_v7  ;;  %v2903_v4 = vpop.eup %2902 }
 0x223   : > { %2134 = vmax.xlane.f32.xlu0 %v2133_v14  ;;  %v2034_v27 = vrot.slane %v1919_v26, %v4223_v45  ;;  %v2905_v21 = vpop.eup %2904 }
 0x224   : > { %v1662_v0 = vpop.xlane.xlu1 %1661  ;;  %v2038_v43 = vrot.slane %v1920_v15, %v4223_v45  ;;  %v2907_v47 = vpop.eup %2906 }
 0x225   : > { %v1918_v60 = vmul.f32 %v2887_v34, %v1662_v0  ;;  %v1671_v46 = vpop.xlane.xlu0 %1670  ;;  %v2909_v44 = vpop.eup %2908 }
 0x226   : > { %v1921_v12 = vmul.f32 %v2893_v42, %v1671_v46  ;;  %v2107_v9 = vsel %vm1491_vm2, %v2038_v43, %v2034_v27  ;;  %v2911_v13 = vpop.eup %2910 }
 0x227   : > { %v2030_v31 = vrot.slane %v1918_v60, %v4223_v45  ;;  %v2913_v60 = vpop.eup %2912 }
 0x228   : > { %v1677_v30 = vpop.xlane.xlu1 %1676  ;;  %v2042_v51 = vrot.slane %v1921_v12, %v4223_v45 }
 0x229   : > { %v1680_v33 = vpop.xlane.xlu0 %1679  ;;  %v2106_v55 = vsel %vm1495_vm4, %v2030_v31, %v2105_v5  ;;  %v1923_v18 = vmul.f32 %v2897_v54, %v1677_v30  ;;  %v2915_v7 = vpop.eup %2914 }
 0x22a   : > { %v2136_v11 = vsel %vm1526_vm5, %v2106_v55, -inf  ;;  %v1924_v29 = vmul.f32 %v2899_v2, %v1680_v33  ;;  %v2108_v37 = vsel %vm1493_vm3, %v2042_v51, %v2107_v9  ;;  %v2917_v31 = vpop.eup %2916 }
 0x22b   : > { %2137 = vmax.xlane.f32.xlu1 %v2136_v11  ;;  %v2050_v59 = vrot.slane %v1923_v18, %v4223_v45  ;;  %v2919_v62 = vpop.eup %2918 }
 0x22c   : > { %v1674_v57 = vpop.xlane.xlu1 %1673  ;;  %v2054_v38 = vrot.slane %v1924_v29, %v4223_v45 }
 0x22d   : > { %v1922_v56 = vmul.f32 %v2895_v22, %v1674_v57  ;;  %v1683_v48 = vpop.xlane.xlu0 %1682 }
 0x22e   : > { %v1925_v63 = vmul.f32 %v2901_v3, %v1683_v48  ;;  %v2110_v6 = vsel %vm1491_vm2, %v2054_v38, %v2050_v59 }
 0x22f   : > { %v2046_v50 = vrot.slane %v1922_v56, %v4223_v45 }
 0x230   : > { %v1689_v17 = vpop.xlane.xlu1 %1688  ;;  %v2058_v49 = vrot.slane %v1925_v63, %v4223_v45 }
 0x231   : > { %v1692_v53 = vpop.xlane.xlu0 %1691  ;;  %v2109_v32 = vsel %vm1495_vm4, %v2046_v50, %v2108_v37  ;;  %v1927_v39 = vmul.f32 %v2905_v21, %v1689_v17 }
 0x232   : > { %v2139_v25 = vsel %vm1526_vm5, %v2109_v32, -inf  ;;  %v1928_v35 = vmul.f32 %v2907_v47, %v1692_v53  ;;  %v2111_v61 = vsel %vm1493_vm3, %v2058_v49, %v2110_v6  ;;  %v3094_v6 = vmov 0  }
 0x233   : > { %2140 = vmax.xlane.f32.xlu0 %v2139_v25  ;;  %v2066_v23 = vrot.slane %v1927_v39, %v4223_v45  ;;  %2775 = vset.pattern.permute.xlu1 %v3094_v6 }
 0x234   : > { %v1686_v52 = vpop.xlane.xlu1 %1685  ;;  %v2070_v36 = vrot.slane %v1928_v35, %v4223_v45  ;;  %2774 = vset.pattern.permute.xlu0 %v3094_v6 }
 0x235   : > { %v1926_v10 = vmul.f32 %v2903_v4, %v1686_v52  ;;  %v1695_v16 = vpop.xlane.xlu0 %1694 }
 0x236   : > { %v1929_v24 = vmul.f32 %v2909_v44, %v1695_v16  ;;  %v2113_v5 = vsel %vm1491_vm2, %v2070_v36, %v2066_v23 }
 0x237   : > { %v2062_v14 = vrot.slane %v1926_v10, %v4223_v45 }
 0x238   : > { %v1701_v34 = vpop.xlane.xlu1 %1700  ;;  %v2074_v26 = vrot.slane %v1929_v24, %v4223_v45 }
 0x239   : > { %v1704_v0 = vpop.xlane.xlu0 %1703  ;;  %v2112_v1 = vsel %vm1495_vm4, %v2062_v14, %v2111_v61  ;;  %v1931_v28 = vmul.f32 %v2911_v13, %v1701_v34 }
 0x23a   : > { %v2142_v46 = vsel %vm1526_vm5, %v2112_v1, -inf  ;;  %v1932_v42 = vmul.f32 %v2913_v60, %v1704_v0  ;;  %v2114_v43 = vsel %vm1493_vm3, %v2074_v26, %v2113_v5 }
 0x23b   : > { %2143 = vmax.xlane.f32.xlu1 %v2142_v46  ;;  %v2082_v41 = vrot.slane %v1931_v28, %v4223_v45 }
 0x23c   : > { %v1698_v15 = vpop.xlane.xlu1 %1697  ;;  %v2086_v33 = vrot.slane %v1932_v42, %v4223_v45 }
 0x23d   : > { %v1930_v19 = vmul.f32 %v2915_v7, %v1698_v15  ;;  %v1707_v12 = vpop.xlane.xlu0 %1706 }
 0x23e   : > { %v1933_v30 = vmul.f32 %v2917_v31, %v1707_v12  ;;  %v2116_v57 = vsel %vm1491_vm2, %v2086_v33, %v2082_v41  ;;  %v4800_v33 = vld [vmem:[#allocation31_spill] sm:$0xff] }
 0x23f   : > { %v2078_v55 = vrot.slane %v1930_v19, %v4223_v45 }
 0x240   : > { %v2090_v11 = vrot.slane %v1933_v30, %v4223_v45  ;;  %v1710_v27 = vpop.xlane.xlu1 %1709 }
 0x241   : > { %v1934_v22 = vmul.f32 %v2919_v62, %v1710_v27  ;;  %v2115_v58 = vsel %vm1495_vm4, %v2078_v55, %v2114_v43  ;;  %v2214_v55 = vsub.s32 1, %v4800_v33  ;;  %v2218_v62 = vsub.s32 2, %v4800_v33  ;;  %v4801_v43 = vld [vmem:[#allocation34_spill] sm:$0xff] }
 0x242   : > { %v2145_v51 = vsel %vm1526_vm5, %v2115_v58, -inf  ;;  %v2117_v56 = vsel %vm1493_vm3, %v2090_v11, %v2116_v57  ;;  %v2222_v11 = vsub.s32 3, %v4800_v33 }
 0x243   : > { %v2094_v54 = vrot.slane %v1934_v22, %v4223_v45  ;;  %2146 = vmax.xlane.f32.xlu0 %v2145_v51 }
 0x245   : > { %v2118_v48 = vsel %vm1495_vm4, %v2094_v54, %v2117_v56  ;;  %v2226_v56 = vsub.s32 4, %v4800_v33 }
 0x246   : > { %v2148_v2 = vsel %vm1526_vm5, %v2118_v48, -inf }
 0x247   : > { %2149 = vmax.xlane.f32.xlu1 %v2148_v2 }
 0x268   : > { %v4463_v8 = vpop.xlane.xlu1 %1531 }
 0x269   : > { %v2383_v18 = vrot.slane %v4463_v8, %v4223_v45 }
 0x270   : > { %v4469_v9 = vpop.xlane.xlu1 %1537 }
 0x271   : > { %v2391_v53 = vrot.slane %v4469_v9, %v4223_v45 }
 0x278   : > { %v4478_v17 = vpop.xlane.xlu1 %1543 }
 0x279   : > { %v2399_v4 = vrot.slane %v4478_v17, %v4223_v45 }
 0x27d   : > { %v4465_v40 = vpop.xlane.xlu0 %1528 }
 0x27e   : > { %v2379_v3 = vrot.slane %v4465_v40, %v4223_v45 }
 0x280   : > { %v2408_v63 = vsel %vm1491_vm2, %v2383_v18, %v2379_v3  ;;  %v4488_v59 = vpop.xlane.xlu1 %1549 }
 0x281   : > { %v4473_v29 = vpop.xlane.xlu0 %1534  ;;  %v2407_v21 = vrot.slane %v4488_v59, %v4223_v45 }
 0x282   : > { %v2387_v50 = vrot.slane %v4473_v29, %v4223_v45 }
 0x284   : > { %v2409_v37 = vsel %vm1493_vm3, %v2387_v50, %v2408_v63  ;;  %v2230_v50 = vsub.s32 5, %v4800_v33 }
 0x285   : > { %v4483_v32 = vpop.xlane.xlu0 %1540  ;;  %v2410_v25 = vsel %vm1495_vm4, %v2391_v53, %v2409_v37 }
 0x286   : > { %v2395_v20 = vrot.slane %v4483_v32, %v4223_v45 }
 0x288   : > { %v2411_v38 = vsel %vm2194_vm6, %v2395_v20, %v2410_v25  ;;  %v2234_v20 = vsub.s32 6, %v4800_v33 }
 0x289   : > { %v4493_v49 = vpop.xlane.xlu0 %1546  ;;  %v2412_v10 = vsel %vm2196_vm7, %v2399_v4, %v2411_v38 }
 0x28a   : > { %v2403_v52 = vrot.slane %v4493_v49, %v4223_v45 }
 0x28c   : > { %v2413_v16 = vsel %vm2198_vm8, %v2403_v52, %v2412_v10  ;;  %v2238_v52 = vsub.s32 7, %v4800_v33 }
 0x28d   : > { %v2414_v47 = vsel %vm2200_vm9, %v2407_v21, %v2413_v16 }
 0x28e   : > { %v2416_v44 = vsel %vm2203_vm10, %v2414_v47, -inf }
 0x28f   : > { %2417 = vmax.xlane.f32.xlu0 %v2416_v44 }
 0x2a5   : > { %v4503_v39 = vpop.xlane.xlu0 %2128 }
 0x2a6   : > { %v2162_v1 = vrot.slane %v4503_v39, %v4223_v45 }
 0x2a8   : > { %v4505_v35 = vpop.xlane.xlu1 %2131 }
 0x2a9   : > { %v2166_v34 = vrot.slane %v4505_v35, %v4223_v45 }
 0x2ab   : > { %v2191_v36 = vsel %vm1491_vm2, %v2166_v34, %v2162_v1 }
 0x2b0   : > { %v4507_v14 = vpop.xlane.xlu0 %2134 }
 0x2b1   : > { %v2170_v61 = vrot.slane %v4507_v14, %v4223_v45 }
 0x2b3   : > { %v2192_v42 = vsel %vm1493_vm3, %v2170_v61, %v2191_v36 }
 0x2b8   : > { %v4509_v13 = vpop.xlane.xlu1 %2137 }
 0x2b9   : > { %v2174_v60 = vrot.slane %v4509_v13, %v4223_v45 }
 0x2bb   : > { %v2193_v26 = vsel %vm1495_vm4, %v2174_v60, %v2192_v42 }
 0x2c0   : > { %v4511_v24 = vpop.xlane.xlu0 %2140 }
 0x2c1   : > { %v2178_v46 = vrot.slane %v4511_v24, %v4223_v45 }
 0x2c3   : > { %v2195_v15 = vsel %vm2194_vm6, %v2178_v46, %v2193_v26 }
 0x2c8   : > { %v4517_v0 = vpop.xlane.xlu1 %2143 }
 0x2c9   : > { %v2182_v28 = vrot.slane %v4517_v0, %v4223_v45 }
 0x2cb   : > { %v2197_v12 = vsel %vm2196_vm7, %v2182_v28, %v2195_v15 }
 0x2d0   : > { %v4525_v23 = vpop.xlane.xlu0 %2146 }
 0x2d1   : > { %v2186_v7 = vrot.slane %v4525_v23, %v4223_v45 }
 0x2d3   : > { %v2199_v30 = vsel %vm2198_vm8, %v2186_v7, %v2197_v12 }
 0x2d4   : > { %v4535_v31 = vpop.xlane.xlu1 %2149 }
 0x2d5   : > { %v2190_v19 = vrot.slane %v4535_v31, %v4223_v45 }
 0x2d7   : > { %v2201_v5 = vsel %vm2200_vm9, %v2190_v19, %v2199_v30 }
 0x2d8   : > { %v2204_v41 = vsel %vm2203_vm10, %v2201_v5, -inf }
 0x2d9   : > { %2205 = vmax.xlane.f32.xlu1 %v2204_v41 }
 0x31c   : > { %v4546_v27 = vpop.xlane.xlu0 %2417 }
 0x31d   : > { %v2423_v22 = vrot.slane %v4546_v27, %v4801_v43  ;;  %v2427_v58 = vrot.slane %v4546_v27, %v2214_v55  ;;  %v2431_v51 = vrot.slane %v4546_v27, %v2218_v62  ;;  %v2435_v48 = vrot.slane %v4546_v27, %v2222_v11 }
 0x31e   : > { %v2439_v63 = vrot.slane %v4546_v27, %v2226_v56  ;;  %v2443_v25 = vrot.slane %v4546_v27, %v2230_v50  ;;  %v2447_v21 = vrot.slane %v4546_v27, %v2234_v20  ;;  %v2451_v6 = vrot.slane %v4546_v27, %v2238_v52 }
 0x31f   : > { %v2460_v57 = vsub.f32 %v4465_v40, %v2423_v22  ;;  %v2461_v54 = vsub.f32 %v4463_v8, %v2427_v58  ;;  %v2462_v2 = vsub.f32 %v4473_v29, %v2431_v51  ;;  %v2463_v37 = vsub.f32 %v4469_v9, %v2435_v48 }
 0x320   : > { %v2464_v38 = vsub.f32 %v4483_v32, %v2439_v63  ;;  %v2465_v10 = vsub.f32 %v4478_v17, %v2443_v25  ;;  %v2466_v34 = vsub.f32 %v4493_v49, %v2447_v21  ;;  %v2467_v60 = vsub.f32 %v4488_v59, %v2451_v6 }
 0x321   : > { %v2468_v3 = vmul.f32 1.442695, %v2460_v57  ;;  %v2470_v18 = vmul.f32 1.442695, %v2461_v54  ;;  %v2472_v53 = vmul.f32 1.442695, %v2462_v2 }
 0x322   : > { %v2474_v4 = vmul.f32 1.442695, %v2463_v37  ;;  %v2476_v16 = vmul.f32 1.442695, %v2464_v38  ;;  %v2478_v61 = vmul.f32 1.442695, %v2465_v10 }
 0x323   : > { %2920 = vpow2.f32 %v2468_v3  ;;  %v2480_v46 = vmul.f32 1.442695, %v2466_v34  ;;  %v2482_v28 = vmul.f32 1.442695, %v2467_v60 }
 0x324   : > { %2922 = vpow2.f32 %v2470_v18 }
 0x325   : > { %2924 = vpow2.f32 %v2472_v53 }
 0x326   : > { %2926 = vpow2.f32 %v2474_v4 }
 0x327   : > { %2928 = vpow2.f32 %v2476_v16 }
 0x328   : > { %2930 = vpow2.f32 %v2478_v61 }
 0x329   : > { %2932 = vpow2.f32 %v2480_v46 }
 0x32a   : > { %2934 = vpow2.f32 %v2482_v28 }
 0x32d   : > { %v2921_v47 = vpop.eup %2920 }
 0x32e   : > { %v2923_v44 = vpop.eup %2922  ;;  %2493 = vperm.xlu0 %2774, %v2921_v47  }
 0x32f   : > { %2496 = vperm.xlu1 %2775, %v2923_v44   ;;  %v2925_v1 = vpop.eup %2924 }
 0x330   : > { %v2927_v36 = vpop.eup %2926 }
 0x331   : > { %v2929_v42 = vpop.eup %2928 }
 0x332   : > { %v2931_v7 = vpop.eup %2930 }
 0x333   : > { %2499 = vperm.xlu1 %2775, %v2925_v1   ;;  %v2933_v26 = vpop.eup %2932 }
 0x334   : > { %v2935_v15 = vpop.eup %2934 }
 0x337   : > { %2502 = vperm.xlu1 %2775, %v2927_v36  }
 0x33b   : > { %2505 = vperm.xlu1 %2775, %v2929_v42  }
 0x33f   : > { %2508 = vperm.xlu1 %2775, %v2931_v7  }
 0x343   : > { %2511 = vperm.xlu1 %2775, %v2933_v26  }
 0x347   : > { %2514 = vperm.xlu1 %2775, %v2935_v15  }
 0x366   : > { %v4569_v19 = vpop.xlane.xlu1 %2205 }
 0x367   : > { %v2211_v12 = vrot.slane %v4569_v19, %v4801_v43  ;;  %v2215_v30 = vrot.slane %v4569_v19, %v2214_v55  ;;  %v2219_v5 = vrot.slane %v4569_v19, %v2218_v62  ;;  %v2223_v41 = vrot.slane %v4569_v19, %v2222_v11 }
 0x368   : > { %v2227_v33 = vrot.slane %v4569_v19, %v2226_v56  ;;  %v2231_v57 = vrot.slane %v4569_v19, %v2230_v50  ;;  %v2235_v55 = vrot.slane %v4569_v19, %v2234_v20  ;;  %v2239_v56 = vrot.slane %v4569_v19, %v2238_v52 }
 0x369   : > { %v2248_v22 = vsub.f32 %v4503_v39, %v2211_v12  ;;  %v2249_v58 = vsub.f32 %v4505_v35, %v2215_v30  ;;  %v2250_v51 = vsub.f32 %v4507_v14, %v2219_v5  ;;  %v2251_v54 = vsub.f32 %v4509_v13, %v2223_v41 }
 0x36a   : > { %v2252_v62 = vsub.f32 %v4511_v24, %v2227_v33  ;;  %v2253_v2 = vsub.f32 %v4517_v0, %v2231_v57  ;;  %v2254_v18 = vsub.f32 %v4525_v23, %v2235_v55  ;;  %v2255_v63 = vsub.f32 %v4535_v31, %v2239_v56 }
 0x36b   : > { %v2256_v48 = vmul.f32 1.442695, %v2248_v22  ;;  %v2258_v43 = vmul.f32 1.442695, %v2249_v58  ;;  %v2260_v11 = vmul.f32 1.442695, %v2250_v51 }
 0x36c   : > { %v2262_v3 = vmul.f32 1.442695, %v2251_v54  ;;  %v2264_v50 = vmul.f32 1.442695, %v2252_v62  ;;  %v2266_v37 = vmul.f32 1.442695, %v2253_v2 }
 0x36d   : > { %2936 = vpow2.f32 %v2256_v48  ;;  %v2268_v53 = vmul.f32 1.442695, %v2254_v18  ;;  %v2270_v20 = vmul.f32 1.442695, %v2255_v63 }
 0x36e   : > { %2938 = vpow2.f32 %v2258_v43 }
 0x36f   : > { %2940 = vpow2.f32 %v2260_v11 }
 0x370   : > { %2942 = vpow2.f32 %v2262_v3 }
 0x371   : > { %2944 = vpow2.f32 %v2264_v50 }
 0x372   : > { %2946 = vpow2.f32 %v2266_v37 }
 0x373   : > { %2948 = vpow2.f32 %v2268_v53 }
 0x374   : > { %2950 = vpow2.f32 %v2270_v20 }
 0x377   : > { %v2937_v25 = vpop.eup %2936 }
 0x378   : > { %v2939_v38 = vpop.eup %2938  ;;  %2281 = vperm.xlu1 %2775, %v2937_v25  }
 0x379   : > { %2284 = vperm.xlu0 %2774, %v2939_v38   ;;  %v2941_v4 = vpop.eup %2940 }
 0x37a   : > { %v2943_v52 = vpop.eup %2942 }
 0x37b   : > { %v2945_v21 = vpop.eup %2944 }
 0x37c   : > { %2287 = vperm.xlu1 %2775, %v2941_v4   ;;  %v2947_v10 = vpop.eup %2946 }
 0x37d   : > { %2290 = vperm.xlu0 %2774, %v2943_v52   ;;  %v2949_v16 = vpop.eup %2948 }
 0x37e   : > { %v2951_v47 = vpop.eup %2950 }
 0x380   : > { %2293 = vperm.xlu1 %2775, %v2945_v21  }
 0x381   : > { %2296 = vperm.xlu0 %2774, %v2947_v10  }
 0x384   : > { %2299 = vperm.xlu1 %2775, %v2949_v16  }
 0x385   : > { %2302 = vperm.xlu0 %2774, %v2951_v47  }
 0x3ad   : > { %v2494_v1 = vpop.permute.xlu0 %2493 }
 0x3ae   : > { %v2497_v44 = vpop.permute.xlu1 %2496  ;;  %v2519_v36 = vrot.slane %v2494_v1, %v4223_v45 }
 0x3af   : > { %v2523_v46 = vrot.slane %v2497_v44, %v4223_v45 }
 0x3b1   : > { %v2548_v15 = vsel %vm1491_vm2, %v2523_v46, %v2519_v36 }
 0x3b2   : > { %v2500_v6 = vpop.permute.xlu1 %2499 }
 0x3b3   : > { %v2527_v28 = vrot.slane %v2500_v6, %v4223_v45 }
 0x3b5   : > { %v2549_v30 = vsel %vm1493_vm3, %v2527_v28, %v2548_v15  ;;  %v2566_v28 = vrot.slane %v4469_v9, 5 }
 0x3b6   : > { %v2503_v34 = vpop.permute.xlu1 %2502 }
 0x3b7   : > { %v2531_v42 = vrot.slane %v2503_v34, %v4223_v45 }
 0x3b9   : > { %v2550_v41 = vsel %vm1495_vm4, %v2531_v42, %v2549_v30 }
 0x3ba   : > { %v2506_v61 = vpop.permute.xlu1 %2505 }
 0x3bb   : > { %v2535_v7 = vrot.slane %v2506_v61, %v4223_v45  ;;  %v2564_v61 = vrot.slane %v4473_v29, 6  ;;  %v2572_v29 = vrot.slane %v4493_v49, 2  ;;  %v2352_v49 = vrot.slane %v4507_v14, 6 }
 0x3bd   : > { %v2551_v33 = vsel %vm2194_vm6, %v2535_v7, %v2550_v41 }
 0x3be   : > { %v2509_v60 = vpop.permute.xlu1 %2508 }
 0x3bf   : > { %v2539_v12 = vrot.slane %v2509_v60, %v4223_v45  ;;  %v2562_v60 = vrot.slane %v4463_v8, 7 }
 0x3c1   : > { %v2552_v58 = vsel %vm2196_vm7, %v2539_v12, %v2551_v33  ;;  %v2563_v46 = vsel %vm1491_vm2, %v2562_v60, %v4465_v40  ;;  %v2354_v33 = vrot.slane %v4509_v13, 5 }
 0x3c2   : > { %v2512_v26 = vpop.permute.xlu1 %2511  ;;  %v2565_v36 = vsel %vm1493_vm3, %v2564_v61, %v2563_v46 }
 0x3c3   : > { %v2543_v5 = vrot.slane %v2512_v26, %v4223_v45  ;;  %v2567_v42 = vsel %vm1495_vm4, %v2566_v28, %v2565_v36  ;;  %v2570_v26 = vrot.slane %v4478_v17, 3  ;;  %v2350_v17 = vrot.slane %v4505_v35, 7 }
 0x3c4   : > { %v2362_v35 = vrot.slane %v4535_v31, 1 }
 0x3c5   : > { %v2553_v57 = vsel %vm2198_vm8, %v2543_v5, %v2552_v58 }
 0x3c6   : > { %v2515_v22 = vpop.permute.xlu1 %2514 }
 0x3c7   : > { %v2547_v51 = vrot.slane %v2515_v22, %v4223_v45  ;;  %v2356_v22 = vrot.slane %v4511_v24, 4 }
 0x3c9   : > { %v2554_v54 = vsel %vm2200_vm9, %v2547_v51, %v2553_v57  ;;  %v2360_v51 = vrot.slane %v4525_v23, 2 }
 0x3ca   : > { %v2556_v48 = vsel %vm2203_vm10, %v2554_v54, 0.0 }
 0x3cb   : > { %2557 = vadd.xlane.f32.xlu1 %v2556_v48 }
 0x3f7   : > { %v2282_v43 = vpop.permute.xlu1 %2281 }
 0x3f8   : > { %v2285_v55 = vpop.permute.xlu0 %2284  ;;  %v2307_v62 = vrot.slane %v2282_v43, %v4223_v45 }
 0x3f9   : > { %v2311_v11 = vrot.slane %v2285_v55, %v4223_v45 }
 0x3fb   : > { %v2288_v56 = vpop.permute.xlu1 %2287  ;;  %v2336_v18 = vsel %vm1491_vm2, %v2311_v11, %v2307_v62 }
 0x3fc   : > { %v2315_v2 = vrot.slane %v2288_v56, %v4223_v45  ;;  %v2291_v3 = vpop.permute.xlu0 %2290 }
 0x3fd   : > { %v2319_v50 = vrot.slane %v2291_v3, %v4223_v45 }
 0x3fe   : > { %v2337_v63 = vsel %vm1493_vm3, %v2315_v2, %v2336_v18 }
 0x3ff   : > { %v2294_v37 = vpop.permute.xlu1 %2293  ;;  %v2338_v25 = vsel %vm1495_vm4, %v2319_v50, %v2337_v63 }
 0x400   : > { %v2323_v53 = vrot.slane %v2294_v37, %v4223_v45  ;;  %v2297_v20 = vpop.permute.xlu0 %2296 }
 0x401   : > { %v2327_v38 = vrot.slane %v2297_v20, %v4223_v45 }
 0x402   : > { %v2339_v4 = vsel %vm2194_vm6, %v2323_v53, %v2338_v25 }
 0x403   : > { %v2300_v52 = vpop.permute.xlu1 %2299  ;;  %v2340_v16 = vsel %vm2196_vm7, %v2327_v38, %v2339_v4 }
 0x404   : > { %v2331_v21 = vrot.slane %v2300_v52, %v4223_v45  ;;  %v2303_v10 = vpop.permute.xlu0 %2302 }
 0x405   : > { %v2335_v47 = vrot.slane %v2303_v10, %v4223_v45  ;;  %v2568_v45 = vrot.slane %v4483_v32, 4  ;;  %v2574_v32 = vrot.slane %v4488_v59, 1  ;;  %v2351_v59 = vsel %vm1491_vm2, %v2350_v17, %v4503_v39 }
 0x406   : > { %v2341_v44 = vsel %vm2198_vm8, %v2331_v21, %v2340_v16  ;;  %v2353_v58 = vsel %vm1493_vm3, %v2352_v49, %v2351_v59 }
 0x407   : > { %v2342_v6 = vsel %vm2200_vm9, %v2335_v47, %v2341_v44  ;;  %v2569_v7 = vsel %vm2194_vm6, %v2568_v45, %v2567_v42  ;;  %v2355_v54 = vsel %vm1495_vm4, %v2354_v33, %v2353_v58 }
 0x408   : > { %v2344_v34 = vsel %vm2203_vm10, %v2342_v6, 0.0  ;;  %v2571_v15 = vsel %vm2196_vm7, %v2570_v26, %v2569_v7  ;;  %v2357_v14 = vsel %vm2194_vm6, %v2356_v22, %v2355_v54 }
 0x409   : > { %2345 = vadd.xlane.f32.xlu0 %v2344_v34  ;;  %v2573_v40 = vsel %vm2198_vm8, %v2572_v29, %v2571_v15 }
 0x40a   : > { %v2575_v30 = vsel %vm2200_vm9, %v2574_v32, %v2573_v40 }
 0x458   : > { %v2558_v1 = vpop.xlane.xlu1 %2557 }
 0x459   : > { %2952 = vlog2.f32 %v2558_v1 }
 0x463   : > { %v2953_v8 = vpop.eup %2952 }
 0x464   : > { %v2560_v12 = vmul.f32 0.6931472, %v2953_v8 }
 0x466   : > { %v2561_v9 = vadd.f32 %v2560_v12, %v4546_v27  ;;  %v2358_v27 = vrot.slane %v4517_v0, 3 }
 0x468   : > { %v2577_v5 = vsub.f32 %v2561_v9, %v2575_v30  ;;  %v2359_v24 = vsel %vm2196_vm7, %v2358_v27, %v2357_v14 }
 0x469   : > { %v2361_v48 = vsel %vm2198_vm8, %v2360_v51, %v2359_v24 }
 0x46a   : > { %2579 = vrot.lane.b32.xlu0 %v2577_v5, %s3095_s21  ;;  %v2363_v0 = vsel %vm2200_vm9, %v2362_v35, %v2361_v48 }
 0x496   : > { %v2346_v41 = vpop.xlane.xlu0 %2345 }
 0x497   : > { %2954 = vlog2.f32 %v2346_v41 }
 0x4a1   : > { %v2955_v57 = vpop.eup %2954 }
 0x4a2   : > { %v2348_v13 = vmul.f32 0.6931472, %v2955_v57 }
 0x4a4   : > { %v2349_v39 = vadd.f32 %v2348_v13, %v4569_v19 }
 0x4a6   : > { %v2365_v23 = vsub.f32 %v2349_v39, %v2363_v0 }
 0x4a8   : > { %2367 = vst.msk [vmem:[%s270_s28] sm:$0xff] %vm2366_vm11, %v2365_v23 }
 0x4dc   : > { %v2580_v31 = vpop.permute.xlu0 %2579 }
 0x4dd   : > { %2583 = vst.msk [vmem:[%s270_s28] sm:$0xff] %vm2582_vm12, %v2580_v31 }
 0x4de PF: > { %p16_p2 = scmp.ge.s32.totalorder %s3138_s17, 4   ;;  %s4802_s12 = smov %s3076_s13 }
 0x4df   : > { %s4803_s13 = smov %s3080_s14  ;;  %s4804_s14 = smov %s3148_s20 }
 0x4e0   : > { %s4805_s15 = smov %s3138_s17  ;;  %18 = sbr.rel (!%p16_p2) target bundleno = 5 (0x5), region = 96 }
 0x4e7   :  { %2603 = vsyncpa [#allocation3], 1 }
 0x4e8   :  { %2605 = vsyncpa [#allocation3 + $0x1], 1 }
 0x4e9   :  { %2606 = vsyncpa [#allocation5], 1 }
 0x4ea   :  { %2608 = vsyncpa [#allocation5 + $0x1], 1 }

</bundles_post_ra>
